<compile_context>
chip_gen: v7x
topology: tpu7x:2x2x1
jax: 0.10.0
libtpu: 0.0.40
codegen_flags: <defaults>
</compile_context>

<pallas_src>
import jax
import jax.numpy as jnp
from jax import lax
from jax.experimental import pallas as pl
from jax.experimental.pallas import tpu as pltpu


def _make_kernel(W, L, Cp):
    """W: image width, L: B*HW lane extent of one block, Cp: padded channels."""
    taps = [(oy, ox) for oy in (-1, 0, 1) for ox in (-1, 0, 1)]

    def kernel(x_ref, m_ref, w1_ref, w2_ref, b1_ref, b2_ref, o_ref, patch_ref):
        # x_ref    : (Cp, L)    f32   activation block (B images, lane-concat)
        # m_ref    : (9, 1, L)  f32   per-tap border masks (channel-invariant)
        # w*_ref   : (Cp, 9*Cp) bf16  im2col weights with folded BN scale
        # b*_ref   : (Cp, 1)    f32   folded BN bias
        # o_ref    : (Cp, L)    f32
        # patch_ref: (9*Cp, L)  bf16  VMEM scratch for the 9-tap slab
        x = x_ref[...]                                      # (Cp, L) f32

        def fill_patches(v):
            # Write the 9 masked, spatially-shifted copies of v into the
            # scratch slab.  Rolls are along the full lane axis; wrap-around
            # across image boundaries only lands on masked-out positions.
            for k, (oy, ox) in enumerate(taps):
                if oy == 0 and ox == 0:
                    piece = v                               # center tap
                else:
                    s = oy * W + ox                         # flattened offset
                    piece = pltpu.roll(v, (-s) % L, axis=1) * m_ref[k]
                patch_ref[k * Cp:(k + 1) * Cp, :] = piece.astype(jnp.bfloat16)

        # conv1 (BN1 scale folded into weights) + bias + relu
        fill_patches(x)
        h = jnp.dot(w1_ref[...], patch_ref[...],
                    preferred_element_type=jnp.float32)     # (Cp, L) f32
        h = jnp.maximum(h + b1_ref[...], 0.0)

        # conv2 (BN2 scale folded) + bias + identity shortcut + relu
        fill_patches(h)
        y = jnp.dot(w2_ref[...], patch_ref[...],
                    preferred_element_type=jnp.float32)
        o_ref[...] = jnp.maximum(y + b2_ref[...] + x, 0.0)

    return kernel


def _pick_batch_tile(N, Cp, HW, budget_bytes=24 << 20):
    """Largest divisor B of N whose per-step VMEM footprint fits the budget,
    preferring >= 2 grid steps so both v7x TensorCores get work."""
    def step_bytes(B):
        acts = 2 * 2 * Cp * B * HW * 4        # x + out blocks, double-buffered, f32
        patch = 9 * Cp * B * HW * 2           # bf16 patch scratch
        return acts + patch

    best = 1
    for B in range(1, N + 1):
        if N % B or step_bytes(B) > budget_bytes:
            continue
        if N // B >= 2 or N == 1:
            best = B
    return best


def basic_block(x_nchw, w1_hwio, w2_hwio, s1, b1, s2, b2):
    N, C, H, W = x_nchw.shape
    assert w1_hwio.shape[-1] == C and w2_hwio.shape[-1] == C, \
        "demo path: identity shortcut (in_planes == planes, stride == 1)"
    HW = H * W
    assert HW % 128 == 0, "flattened spatial extent must be lane-aligned"

    Cp = ((C + 15) // 16) * 16               # bf16 sublane packing
    B = _pick_batch_tile(N, Cp, HW)          # images per grid step
    G = N // B
    L = B * HW                               # lane extent of one block

    # Activation layout: NCHW -> (Cp, N*HW), channels in sublanes, batch*spatial
    # dense in lanes.  TODO(synk): when chaining blocks, keep activations in
    # this padded layout between blocks and do this transform (and the inverse
    # below) only at the network boundary.
    x = jnp.transpose(x_nchw, (1, 0, 2, 3)).reshape(C, N * HW)
    x = jnp.pad(x, ((0, Cp - C), (0, 0)))

    # im2col weights with folded BN scale: (3,3,Ci,Co) HWIO -> (Cp, 9*Cp) bf16,
    # column index = ((ky*3)+kx)*Cp + ci.
    def pack_w(w, scale):
        w = w * scale[None, None, None, :]
        w = jnp.pad(w, ((0, 0), (0, 0), (0, Cp - C), (0, Cp - C)))
        return (jnp.transpose(w, (3, 0, 1, 2))
                .reshape(Cp, 9 * Cp).astype(jnp.bfloat16))

    w1m = pack_w(w1_hwio, s1)
    w2m = pack_w(w2_hwio, s2)

    def pack_b(v):                            # folded BN bias -> (Cp, 1) f32
        return jnp.pad(v, (0, Cp - C)).reshape(Cp, 1).astype(jnp.float32)

    b1c, b2c = pack_b(b1), pack_b(b2)

    # Per-tap border-validity masks (pure geometry, channel-invariant),
    # tiled across the B images of one block: (9, 1, L).
    yy, xx = jnp.meshgrid(jnp.arange(H), jnp.arange(W), indexing="ij")
    rows = []
    for oy in (-1, 0, 1):
        for ox in (-1, 0, 1):
            valid = ((yy + oy >= 0) & (yy + oy < H) &
                     (xx + ox >= 0) & (xx + ox < W))
            rows.append(valid.reshape(HW).astype(jnp.float32))
    masks = jnp.tile(jnp.stack(rows), (1, B))[:, None, :]     # (9, 1, L)

    flops = 2 * 2 * Cp * (9 * Cp) * N * HW                    # 2 convs
    bytes_accessed = (4 * 2 * Cp * N * HW                     # x in + out
                      + 4 * 9 * L                             # masks
                      + 2 * 2 * Cp * 9 * Cp                   # bf16 weights
                      + 4 * 2 * Cp)                           # biases

    out = pl.pallas_call(
        _make_kernel(W, L, Cp),
        out_shape=jax.ShapeDtypeStruct((Cp, N * HW), jnp.float32),
        grid_spec=pltpu.PrefetchScalarGridSpec(
            num_scalar_prefetch=0,
            grid=(G,),
            in_specs=[
                pl.BlockSpec((Cp, L), lambda n: (0, n)),        # x
                pl.BlockSpec((9, 1, L), lambda n: (0, 0, 0)),   # masks
                pl.BlockSpec((Cp, 9 * Cp), lambda n: (0, 0)),   # w1 (bf16)
                pl.BlockSpec((Cp, 9 * Cp), lambda n: (0, 0)),   # w2 (bf16)
                pl.BlockSpec((Cp, 1), lambda n: (0, 0)),        # b1
                pl.BlockSpec((Cp, 1), lambda n: (0, 0)),        # b2
            ],
            out_specs=pl.BlockSpec((Cp, L), lambda n: (0, n)),
            scratch_shapes=[pltpu.VMEM((9 * Cp, L), jnp.bfloat16)],
        ),
        compiler_params=pltpu.CompilerParams(
            dimension_semantics=("parallel",),
            vmem_limit_bytes=32 << 20),
        cost_estimate=pl.CostEstimate(flops=flops, transcendentals=0,
                                      bytes_accessed=bytes_accessed),
    )(x, masks, w1m, w2m, b1c, b2c)

    # Drop channel padding, back to NCHW to match the PyTorch module interface.
    return out[:C].reshape(C, N, H, W).transpose(1, 0, 2, 3)


def reference_block(x_nchw, w1, w2, s1, b1, s2, b2):
    dn = lax.conv_dimension_numbers(x_nchw.shape, w1.shape,
                                    ("NCHW", "HWIO", "NCHW"))
    y = lax.conv_general_dilated(x_nchw, w1, (1, 1), "SAME",
                                 dimension_numbers=dn,
                                 precision=lax.Precision.HIGHEST)
    y = jnp.maximum(y * s1[None, :, None, None] + b1[None, :, None, None], 0.0)
    z = lax.conv_general_dilated(y, w2, (1, 1), "SAME",
                                 dimension_numbers=dn,
                                 precision=lax.Precision.HIGHEST)
    z = z * s2[None, :, None, None] + b2[None, :, None, None]
    return jnp.maximum(z + x_nchw, 0.0)


if __name__ == "__main__":
    key = jax.random.PRNGKey(0)
    ks = jax.random.split(key, 12)

    # Small demo shapes: batch=4 (-> batch tile B=2, grid of 2 parallel steps),
    # channels=4, spatial=16x16  (in_planes == planes, stride == 1).
    N, C, H, W = 4, 4, 16, 16
    eps = 1e-5

    x_nchw = jax.random.normal(ks[0], (N, C, H, W), jnp.float32)
    w1 = 0.2 * jax.random.normal(ks[1], (3, 3, C, C), jnp.float32)   # HWIO
    w2 = 0.2 * jax.random.normal(ks[2], (3, 3, C, C), jnp.float32)   # HWIO

    gamma1 = 1.0 + 0.1 * jax.random.normal(ks[3], (C,), jnp.float32)
    beta1 = 0.1 * jax.random.normal(ks[4], (C,), jnp.float32)
    mean1 = 0.1 * jax.random.normal(ks[5], (C,), jnp.float32)
    var1 = jnp.abs(jax.random.normal(ks[6], (C,), jnp.float32)) + 0.5
    gamma2 = 1.0 + 0.1 * jax.random.normal(ks[7], (C,), jnp.float32)
    beta2 = 0.1 * jax.random.normal(ks[8], (C,), jnp.float32)
    mean2 = 0.1 * jax.random.normal(ks[9], (C,), jnp.float32)
    var2 = jnp.abs(jax.random.normal(ks[10], (C,), jnp.float32)) + 0.5

    # Fold BatchNorm (inference) to affine form.
    s1 = gamma1 / jnp.sqrt(var1 + eps)
    b1 = beta1 - mean1 * s1
    s2 = gamma2 / jnp.sqrt(var2 + eps)
    b2 = beta2 - mean2 * s2

    out = basic_block(x_nchw, w1, w2, s1, b1, s2, b2)
    out = jax.block_until_ready(out)

    ref = reference_block(x_nchw, w1, w2, s1, b1, s2, b2)
    max_err = float(jnp.max(jnp.abs(out - ref)))
    # bf16 MXU operands vs. f32 HIGHEST reference -> loose tolerance; genuine
    # structural bugs (wrong tap/mask/layout) would be O(1) errors.
    assert jnp.allclose(out, ref, atol=1e-1, rtol=1e-1), max_err

    print("KERNEL_OK")
</pallas_src>

<mosaic_0001>
module attributes {stable_mosaic.version = 11 : i64} {
  func.func @kernel(%arg0: i32, %arg1: memref<16x512xf32, #tpu.memory_space<vmem>>, %arg2: memref<9x1x512xf32, #tpu.memory_space<vmem>>, %arg3: memref<16x144xbf16, #tpu.memory_space<vmem>>, %arg4: memref<16x144xbf16, #tpu.memory_space<vmem>>, %arg5: memref<16x1xf32, #tpu.memory_space<vmem>>, %arg6: memref<16x1xf32, #tpu.memory_space<vmem>>, %arg7: memref<16x512xf32, #tpu.memory_space<vmem>>, %arg8: memref<144x512xbf16, #tpu.memory_space<vmem>>) attributes {dimension_semantics = [#tpu.dimension_semantics<parallel>], iteration_bounds = array<i64: 2>, scalar_prefetch = 0 : i64, scratch_operands = 1 : i64, tpu.core_type = #tpu.core_type<tc>, window_params = [{transform_indices = @transform_0, window_bounds = array<i64: 16, 512>}, {pipeline_mode = #tpu.pipeline_mode<synchronous>, transform_indices = @transform_1, window_bounds = array<i64: 9, 1, 512>}, {pipeline_mode = #tpu.pipeline_mode<synchronous>, transform_indices = @transform_2, window_bounds = array<i64: 16, 144>}, {pipeline_mode = #tpu.pipeline_mode<synchronous>, transform_indices = @transform_3, window_bounds = array<i64: 16, 144>}, {pipeline_mode = #tpu.pipeline_mode<synchronous>, transform_indices = @transform_4, window_bounds = array<i64: 16, 1>}, {pipeline_mode = #tpu.pipeline_mode<synchronous>, transform_indices = @transform_5, window_bounds = array<i64: 16, 1>}, {transform_indices = @transform_6, window_bounds = array<i64: 16, 512>}]} {
    %c0 = arith.constant 0 : index
    %c0_0 = arith.constant 0 : index
    %0 = vector.load %arg1[%c0, %c0_0] : memref<16x512xf32, #tpu.memory_space<vmem>>, vector<16x512xf32>
    %c17_i32 = arith.constant 17 : i32
    %1 = tpu.dynamic_rotate %0 by %c17_i32 dim 1 : vector<16x512xf32>, i32 -> vector<16x512xf32>
    %c0_1 = arith.constant 0 : index
    %c0_2 = arith.constant 0 : index
    %c0_3 = arith.constant 0 : index
    %2 = vector.load %arg2[%c0_1, %c0_2, %c0_3] : memref<9x1x512xf32, #tpu.memory_space<vmem>>, vector<1x1x512xf32>
    %3 = vector.shape_cast %2 : vector<1x1x512xf32> to vector<1x512xf32>
    %4 = vector.broadcast %3 : vector<1x512xf32> to vector<16x512xf32>
    %5 = arith.mulf %1, %4 : vector<16x512xf32>
    %6 = arith.truncf %5 : vector<16x512xf32> to vector<16x512xbf16>
    %c0_4 = arith.constant 0 : index
    %c0_5 = arith.constant 0 : index
    %7 = vector.load %arg8[%c0_4, %c0_5] : memref<144x512xbf16, #tpu.memory_space<vmem>>, vector<16x512xbf16>
    tpu.vector_store %arg8[%c0_4, %c0_5], %6 {strides = array<i32>} : memref<144x512xbf16, #tpu.memory_space<vmem>>, vector<16x512xbf16>,
    %c16_i32 = arith.constant 16 : i32
    %8 = tpu.dynamic_rotate %0 by %c16_i32 dim 1 : vector<16x512xf32>, i32 -> vector<16x512xf32>
    %c1 = arith.constant 1 : index
    %c0_6 = arith.constant 0 : index
    %c0_7 = arith.constant 0 : index
    %9 = vector.load %arg2[%c1, %c0_6, %c0_7] : memref<9x1x512xf32, #tpu.memory_space<vmem>>, vector<1x1x512xf32>
    %10 = vector.shape_cast %9 : vector<1x1x512xf32> to vector<1x512xf32>
    %11 = vector.broadcast %10 : vector<1x512xf32> to vector<16x512xf32>
    %12 = arith.mulf %8, %11 : vector<16x512xf32>
    %13 = arith.truncf %12 : vector<16x512xf32> to vector<16x512xbf16>
    %c16 = arith.constant 16 : index
    %c0_8 = arith.constant 0 : index
    %14 = vector.load %arg8[%c16, %c0_8] : memref<144x512xbf16, #tpu.memory_space<vmem>>, vector<16x512xbf16>
    tpu.vector_store %arg8[%c16, %c0_8], %13 {strides = array<i32>} : memref<144x512xbf16, #tpu.memory_space<vmem>>, vector<16x512xbf16>,
    %c15_i32 = arith.constant 15 : i32
    %15 = tpu.dynamic_rotate %0 by %c15_i32 dim 1 : vector<16x512xf32>, i32 -> vector<16x512xf32>
    %c2 = arith.constant 2 : index
    %c0_9 = arith.constant 0 : index
    %c0_10 = arith.constant 0 : index
    %16 = vector.load %arg2[%c2, %c0_9, %c0_10] : memref<9x1x512xf32, #tpu.memory_space<vmem>>, vector<1x1x512xf32>
    %17 = vector.shape_cast %16 : vector<1x1x512xf32> to vector<1x512xf32>
    %18 = vector.broadcast %17 : vector<1x512xf32> to vector<16x512xf32>
    %19 = arith.mulf %15, %18 : vector<16x512xf32>
    %20 = arith.truncf %19 : vector<16x512xf32> to vector<16x512xbf16>
    %c32 = arith.constant 32 : index
    %c0_11 = arith.constant 0 : index
    %21 = vector.load %arg8[%c32, %c0_11] : memref<144x512xbf16, #tpu.memory_space<vmem>>, vector<16x512xbf16>
    tpu.vector_store %arg8[%c32, %c0_11], %20 {strides = array<i32>} : memref<144x512xbf16, #tpu.memory_space<vmem>>, vector<16x512xbf16>,
    %c1_i32 = arith.constant 1 : i32
    %22 = tpu.dynamic_rotate %0 by %c1_i32 dim 1 : vector<16x512xf32>, i32 -> vector<16x512xf32>
    %c3 = arith.constant 3 : index
    %c0_12 = arith.constant 0 : index
    %c0_13 = arith.constant 0 : index
    %23 = vector.load %arg2[%c3, %c0_12, %c0_13] : memref<9x1x512xf32, #tpu.memory_space<vmem>>, vector<1x1x512xf32>
    %24 = vector.shape_cast %23 : vector<1x1x512xf32> to vector<1x512xf32>
    %25 = vector.broadcast %24 : vector<1x512xf32> to vector<16x512xf32>
    %26 = arith.mulf %22, %25 : vector<16x512xf32>
    %27 = arith.truncf %26 : vector<16x512xf32> to vector<16x512xbf16>
    %c48 = arith.constant 48 : index
    %c0_14 = arith.constant 0 : index
    %28 = vector.load %arg8[%c48, %c0_14] : memref<144x512xbf16, #tpu.memory_space<vmem>>, vector<16x512xbf16>
    tpu.vector_store %arg8[%c48, %c0_14], %27 {strides = array<i32>} : memref<144x512xbf16, #tpu.memory_space<vmem>>, vector<16x512xbf16>,
    %29 = arith.truncf %0 : vector<16x512xf32> to vector<16x512xbf16>
    %c64 = arith.constant 64 : index
    %c0_15 = arith.constant 0 : index
    %30 = vector.load %arg8[%c64, %c0_15] : memref<144x512xbf16, #tpu.memory_space<vmem>>, vector<16x512xbf16>
    tpu.vector_store %arg8[%c64, %c0_15], %29 {strides = array<i32>} : memref<144x512xbf16, #tpu.memory_space<vmem>>, vector<16x512xbf16>,
    %c511_i32 = arith.constant 511 : i32
    %31 = tpu.dynamic_rotate %0 by %c511_i32 dim 1 : vector<16x512xf32>, i32 -> vector<16x512xf32>
    %c5 = arith.constant 5 : index
    %c0_16 = arith.constant 0 : index
    %c0_17 = arith.constant 0 : index
    %32 = vector.load %arg2[%c5, %c0_16, %c0_17] : memref<9x1x512xf32, #tpu.memory_space<vmem>>, vector<1x1x512xf32>
    %33 = vector.shape_cast %32 : vector<1x1x512xf32> to vector<1x512xf32>
    %34 = vector.broadcast %33 : vector<1x512xf32> to vector<16x512xf32>
    %35 = arith.mulf %31, %34 : vector<16x512xf32>
    %36 = arith.truncf %35 : vector<16x512xf32> to vector<16x512xbf16>
    %c80 = arith.constant 80 : index
    %c0_18 = arith.constant 0 : index
    %37 = vector.load %arg8[%c80, %c0_18] : memref<144x512xbf16, #tpu.memory_space<vmem>>, vector<16x512xbf16>
    tpu.vector_store %arg8[%c80, %c0_18], %36 {strides = array<i32>} : memref<144x512xbf16, #tpu.memory_space<vmem>>, vector<16x512xbf16>,
    %c497_i32 = arith.constant 497 : i32
    %38 = tpu.dynamic_rotate %0 by %c497_i32 dim 1 : vector<16x512xf32>, i32 -> vector<16x512xf32>
    %c6 = arith.constant 6 : index
    %c0_19 = arith.constant 0 : index
    %c0_20 = arith.constant 0 : index
    %39 = vector.load %arg2[%c6, %c0_19, %c0_20] : memref<9x1x512xf32, #tpu.memory_space<vmem>>, vector<1x1x512xf32>
    %40 = vector.shape_cast %39 : vector<1x1x512xf32> to vector<1x512xf32>
    %41 = vector.broadcast %40 : vector<1x512xf32> to vector<16x512xf32>
    %42 = arith.mulf %38, %41 : vector<16x512xf32>
    %43 = arith.truncf %42 : vector<16x512xf32> to vector<16x512xbf16>
    %c96 = arith.constant 96 : index
    %c0_21 = arith.constant 0 : index
    %44 = vector.load %arg8[%c96, %c0_21] : memref<144x512xbf16, #tpu.memory_space<vmem>>, vector<16x512xbf16>
    tpu.vector_store %arg8[%c96, %c0_21], %43 {strides = array<i32>} : memref<144x512xbf16, #tpu.memory_space<vmem>>, vector<16x512xbf16>,
    %c496_i32 = arith.constant 496 : i32
    %45 = tpu.dynamic_rotate %0 by %c496_i32 dim 1 : vector<16x512xf32>, i32 -> vector<16x512xf32>
    %c7 = arith.constant 7 : index
    %c0_22 = arith.constant 0 : index
    %c0_23 = arith.constant 0 : index
    %46 = vector.load %arg2[%c7, %c0_22, %c0_23] : memref<9x1x512xf32, #tpu.memory_space<vmem>>, vector<1x1x512xf32>
    %47 = vector.shape_cast %46 : vector<1x1x512xf32> to vector<1x512xf32>
    %48 = vector.broadcast %47 : vector<1x512xf32> to vector<16x512xf32>
    %49 = arith.mulf %45, %48 : vector<16x512xf32>
    %50 = arith.truncf %49 : vector<16x512xf32> to vector<16x512xbf16>
    %c112 = arith.constant 112 : index
    %c0_24 = arith.constant 0 : index
    %51 = vector.load %arg8[%c112, %c0_24] : memref<144x512xbf16, #tpu.memory_space<vmem>>, vector<16x512xbf16>
    tpu.vector_store %arg8[%c112, %c0_24], %50 {strides = array<i32>} : memref<144x512xbf16, #tpu.memory_space<vmem>>, vector<16x512xbf16>,
    %c495_i32 = arith.constant 495 : i32
    %52 = tpu.dynamic_rotate %0 by %c495_i32 dim 1 : vector<16x512xf32>, i32 -> vector<16x512xf32>
    %c8 = arith.constant 8 : index
    %c0_25 = arith.constant 0 : index
    %c0_26 = arith.constant 0 : index
    %53 = vector.load %arg2[%c8, %c0_25, %c0_26] : memref<9x1x512xf32, #tpu.memory_space<vmem>>, vector<1x1x512xf32>
    %54 = vector.shape_cast %53 : vector<1x1x512xf32> to vector<1x512xf32>
    %55 = vector.broadcast %54 : vector<1x512xf32> to vector<16x512xf32>
    %56 = arith.mulf %52, %55 : vector<16x512xf32>
    %57 = arith.truncf %56 : vector<16x512xf32> to vector<16x512xbf16>
    %c128 = arith.constant 128 : index
    %c0_27 = arith.constant 0 : index
    %58 = vector.load %arg8[%c128, %c0_27] : memref<144x512xbf16, #tpu.memory_space<vmem>>, vector<16x512xbf16>
    tpu.vector_store %arg8[%c128, %c0_27], %57 {strides = array<i32>} : memref<144x512xbf16, #tpu.memory_space<vmem>>, vector<16x512xbf16>,
    %c0_28 = arith.constant 0 : index
    %c0_29 = arith.constant 0 : index
    %59 = vector.load %arg3[%c0_28, %c0_29] : memref<16x144xbf16, #tpu.memory_space<vmem>>, vector<16x144xbf16>
    %c0_30 = arith.constant 0 : index
    %c0_31 = arith.constant 0 : index
    %60 = vector.load %arg8[%c0_30, %c0_31] : memref<144x512xbf16, #tpu.memory_space<vmem>>, vector<144x512xbf16>
    %cst = arith.constant dense<0.000000e+00> : vector<16x512xf32>
    %61 = tpu.matmul %59, %60, %cst {dimension_numbers = #tpu.dot_dimension_numbers<[1], [0], [0], [1], [0, 0, 1, 1], [], []>} : vector<16x144xbf16>, vector<144x512xbf16>, vector<16x512xf32> -> vector<16x512xf32>
    %c0_32 = arith.constant 0 : index
    %c0_33 = arith.constant 0 : index
    %62 = vector.load %arg5[%c0_32, %c0_33] : memref<16x1xf32, #tpu.memory_space<vmem>>, vector<16x1xf32>
    %63 = vector.broadcast %62 : vector<16x1xf32> to vector<16x512xf32>
    %64 = arith.addf %61, %63 : vector<16x512xf32>
    %cst_34 = arith.constant 0.000000e+00 : f32
    %65 = vector.broadcast %cst_34 : f32 to vector<16x512xf32>
    %66 = arith.maximumf %64, %65 : vector<16x512xf32>
    %c17_i32_35 = arith.constant 17 : i32
    %67 = tpu.dynamic_rotate %66 by %c17_i32_35 dim 1 : vector<16x512xf32>, i32 -> vector<16x512xf32>
    %c0_36 = arith.constant 0 : index
    %c0_37 = arith.constant 0 : index
    %c0_38 = arith.constant 0 : index
    %68 = vector.load %arg2[%c0_36, %c0_37, %c0_38] : memref<9x1x512xf32, #tpu.memory_space<vmem>>, vector<1x1x512xf32>
    %69 = vector.shape_cast %68 : vector<1x1x512xf32> to vector<1x512xf32>
    %70 = vector.broadcast %69 : vector<1x512xf32> to vector<16x512xf32>
    %71 = arith.mulf %67, %70 : vector<16x512xf32>
    %72 = arith.truncf %71 : vector<16x512xf32> to vector<16x512xbf16>
    %c0_39 = arith.constant 0 : index
    %c0_40 = arith.constant 0 : index
    %73 = vector.load %arg8[%c0_39, %c0_40] : memref<144x512xbf16, #tpu.memory_space<vmem>>, vector<16x512xbf16>
    tpu.vector_store %arg8[%c0_39, %c0_40], %72 {strides = array<i32>} : memref<144x512xbf16, #tpu.memory_space<vmem>>, vector<16x512xbf16>,
    %c16_i32_41 = arith.constant 16 : i32
    %74 = tpu.dynamic_rotate %66 by %c16_i32_41 dim 1 : vector<16x512xf32>, i32 -> vector<16x512xf32>
    %c1_42 = arith.constant 1 : index
    %c0_43 = arith.constant 0 : index
    %c0_44 = arith.constant 0 : index
    %75 = vector.load %arg2[%c1_42, %c0_43, %c0_44] : memref<9x1x512xf32, #tpu.memory_space<vmem>>, vector<1x1x512xf32>
    %76 = vector.shape_cast %75 : vector<1x1x512xf32> to vector<1x512xf32>
    %77 = vector.broadcast %76 : vector<1x512xf32> to vector<16x512xf32>
    %78 = arith.mulf %74, %77 : vector<16x512xf32>
    %79 = arith.truncf %78 : vector<16x512xf32> to vector<16x512xbf16>
    %c16_45 = arith.constant 16 : index
    %c0_46 = arith.constant 0 : index
    %80 = vector.load %arg8[%c16_45, %c0_46] : memref<144x512xbf16, #tpu.memory_space<vmem>>, vector<16x512xbf16>
    tpu.vector_store %arg8[%c16_45, %c0_46], %79 {strides = array<i32>} : memref<144x512xbf16, #tpu.memory_space<vmem>>, vector<16x512xbf16>,
    %c15_i32_47 = arith.constant 15 : i32
    %81 = tpu.dynamic_rotate %66 by %c15_i32_47 dim 1 : vector<16x512xf32>, i32 -> vector<16x512xf32>
    %c2_48 = arith.constant 2 : index
    %c0_49 = arith.constant 0 : index
    %c0_50 = arith.constant 0 : index
    %82 = vector.load %arg2[%c2_48, %c0_49, %c0_50] : memref<9x1x512xf32, #tpu.memory_space<vmem>>, vector<1x1x512xf32>
    %83 = vector.shape_cast %82 : vector<1x1x512xf32> to vector<1x512xf32>
    %84 = vector.broadcast %83 : vector<1x512xf32> to vector<16x512xf32>
    %85 = arith.mulf %81, %84 : vector<16x512xf32>
    %86 = arith.truncf %85 : vector<16x512xf32> to vector<16x512xbf16>
    %c32_51 = arith.constant 32 : index
    %c0_52 = arith.constant 0 : index
    %87 = vector.load %arg8[%c32_51, %c0_52] : memref<144x512xbf16, #tpu.memory_space<vmem>>, vector<16x512xbf16>
    tpu.vector_store %arg8[%c32_51, %c0_52], %86 {strides = array<i32>} : memref<144x512xbf16, #tpu.memory_space<vmem>>, vector<16x512xbf16>,
    %c1_i32_53 = arith.constant 1 : i32
    %88 = tpu.dynamic_rotate %66 by %c1_i32_53 dim 1 : vector<16x512xf32>, i32 -> vector<16x512xf32>
    %c3_54 = arith.constant 3 : index
    %c0_55 = arith.constant 0 : index
    %c0_56 = arith.constant 0 : index
    %89 = vector.load %arg2[%c3_54, %c0_55, %c0_56] : memref<9x1x512xf32, #tpu.memory_space<vmem>>, vector<1x1x512xf32>
    %90 = vector.shape_cast %89 : vector<1x1x512xf32> to vector<1x512xf32>
    %91 = vector.broadcast %90 : vector<1x512xf32> to vector<16x512xf32>
    %92 = arith.mulf %88, %91 : vector<16x512xf32>
    %93 = arith.truncf %92 : vector<16x512xf32> to vector<16x512xbf16>
    %c48_57 = arith.constant 48 : index
    %c0_58 = arith.constant 0 : index
    %94 = vector.load %arg8[%c48_57, %c0_58] : memref<144x512xbf16, #tpu.memory_space<vmem>>, vector<16x512xbf16>
    tpu.vector_store %arg8[%c48_57, %c0_58], %93 {strides = array<i32>} : memref<144x512xbf16, #tpu.memory_space<vmem>>, vector<16x512xbf16>,
    %95 = arith.truncf %66 : vector<16x512xf32> to vector<16x512xbf16>
    %c64_59 = arith.constant 64 : index
    %c0_60 = arith.constant 0 : index
    %96 = vector.load %arg8[%c64_59, %c0_60] : memref<144x512xbf16, #tpu.memory_space<vmem>>, vector<16x512xbf16>
    tpu.vector_store %arg8[%c64_59, %c0_60], %95 {strides = array<i32>} : memref<144x512xbf16, #tpu.memory_space<vmem>>, vector<16x512xbf16>,
    %c511_i32_61 = arith.constant 511 : i32
    %97 = tpu.dynamic_rotate %66 by %c511_i32_61 dim 1 : vector<16x512xf32>, i32 -> vector<16x512xf32>
    %c5_62 = arith.constant 5 : index
    %c0_63 = arith.constant 0 : index
    %c0_64 = arith.constant 0 : index
    %98 = vector.load %arg2[%c5_62, %c0_63, %c0_64] : memref<9x1x512xf32, #tpu.memory_space<vmem>>, vector<1x1x512xf32>
    %99 = vector.shape_cast %98 : vector<1x1x512xf32> to vector<1x512xf32>
    %100 = vector.broadcast %99 : vector<1x512xf32> to vector<16x512xf32>
    %101 = arith.mulf %97, %100 : vector<16x512xf32>
    %102 = arith.truncf %101 : vector<16x512xf32> to vector<16x512xbf16>
    %c80_65 = arith.constant 80 : index
    %c0_66 = arith.constant 0 : index
    %103 = vector.load %arg8[%c80_65, %c0_66] : memref<144x512xbf16, #tpu.memory_space<vmem>>, vector<16x512xbf16>
    tpu.vector_store %arg8[%c80_65, %c0_66], %102 {strides = array<i32>} : memref<144x512xbf16, #tpu.memory_space<vmem>>, vector<16x512xbf16>,
    %c497_i32_67 = arith.constant 497 : i32
    %104 = tpu.dynamic_rotate %66 by %c497_i32_67 dim 1 : vector<16x512xf32>, i32 -> vector<16x512xf32>
    %c6_68 = arith.constant 6 : index
    %c0_69 = arith.constant 0 : index
    %c0_70 = arith.constant 0 : index
    %105 = vector.load %arg2[%c6_68, %c0_69, %c0_70] : memref<9x1x512xf32, #tpu.memory_space<vmem>>, vector<1x1x512xf32>
    %106 = vector.shape_cast %105 : vector<1x1x512xf32> to vector<1x512xf32>
    %107 = vector.broadcast %106 : vector<1x512xf32> to vector<16x512xf32>
    %108 = arith.mulf %104, %107 : vector<16x512xf32>
    %109 = arith.truncf %108 : vector<16x512xf32> to vector<16x512xbf16>
    %c96_71 = arith.constant 96 : index
    %c0_72 = arith.constant 0 : index
    %110 = vector.load %arg8[%c96_71, %c0_72] : memref<144x512xbf16, #tpu.memory_space<vmem>>, vector<16x512xbf16>
    tpu.vector_store %arg8[%c96_71, %c0_72], %109 {strides = array<i32>} : memref<144x512xbf16, #tpu.memory_space<vmem>>, vector<16x512xbf16>,
    %c496_i32_73 = arith.constant 496 : i32
    %111 = tpu.dynamic_rotate %66 by %c496_i32_73 dim 1 : vector<16x512xf32>, i32 -> vector<16x512xf32>
    %c7_74 = arith.constant 7 : index
    %c0_75 = arith.constant 0 : index
    %c0_76 = arith.constant 0 : index
    %112 = vector.load %arg2[%c7_74, %c0_75, %c0_76] : memref<9x1x512xf32, #tpu.memory_space<vmem>>, vector<1x1x512xf32>
    %113 = vector.shape_cast %112 : vector<1x1x512xf32> to vector<1x512xf32>
    %114 = vector.broadcast %113 : vector<1x512xf32> to vector<16x512xf32>
    %115 = arith.mulf %111, %114 : vector<16x512xf32>
    %116 = arith.truncf %115 : vector<16x512xf32> to vector<16x512xbf16>
    %c112_77 = arith.constant 112 : index
    %c0_78 = arith.constant 0 : index
    %117 = vector.load %arg8[%c112_77, %c0_78] : memref<144x512xbf16, #tpu.memory_space<vmem>>, vector<16x512xbf16>
    tpu.vector_store %arg8[%c112_77, %c0_78], %116 {strides = array<i32>} : memref<144x512xbf16, #tpu.memory_space<vmem>>, vector<16x512xbf16>,
    %c495_i32_79 = arith.constant 495 : i32
    %118 = tpu.dynamic_rotate %66 by %c495_i32_79 dim 1 : vector<16x512xf32>, i32 -> vector<16x512xf32>
    %c8_80 = arith.constant 8 : index
    %c0_81 = arith.constant 0 : index
    %c0_82 = arith.constant 0 : index
    %119 = vector.load %arg2[%c8_80, %c0_81, %c0_82] : memref<9x1x512xf32, #tpu.memory_space<vmem>>, vector<1x1x512xf32>
    %120 = vector.shape_cast %119 : vector<1x1x512xf32> to vector<1x512xf32>
    %121 = vector.broadcast %120 : vector<1x512xf32> to vector<16x512xf32>
    %122 = arith.mulf %118, %121 : vector<16x512xf32>
    %123 = arith.truncf %122 : vector<16x512xf32> to vector<16x512xbf16>
    %c128_83 = arith.constant 128 : index
    %c0_84 = arith.constant 0 : index
    %124 = vector.load %arg8[%c128_83, %c0_84] : memref<144x512xbf16, #tpu.memory_space<vmem>>, vector<16x512xbf16>
    tpu.vector_store %arg8[%c128_83, %c0_84], %123 {strides = array<i32>} : memref<144x512xbf16, #tpu.memory_space<vmem>>, vector<16x512xbf16>,
    %c0_85 = arith.constant 0 : index
    %c0_86 = arith.constant 0 : index
    %125 = vector.load %arg4[%c0_85, %c0_86] : memref<16x144xbf16, #tpu.memory_space<vmem>>, vector<16x144xbf16>
    %c0_87 = arith.constant 0 : index
    %c0_88 = arith.constant 0 : index
    %126 = vector.load %arg8[%c0_87, %c0_88] : memref<144x512xbf16, #tpu.memory_space<vmem>>, vector<144x512xbf16>
    %cst_89 = arith.constant dense<0.000000e+00> : vector<16x512xf32>
    %127 = tpu.matmul %125, %126, %cst_89 {dimension_numbers = #tpu.dot_dimension_numbers<[1], [0], [0], [1], [0, 0, 1, 1], [], []>} : vector<16x144xbf16>, vector<144x512xbf16>, vector<16x512xf32> -> vector<16x512xf32>
    %c0_90 = arith.constant 0 : index
    %c0_91 = arith.constant 0 : index
    %128 = vector.load %arg6[%c0_90, %c0_91] : memref<16x1xf32, #tpu.memory_space<vmem>>, vector<16x1xf32>
    %129 = vector.broadcast %128 : vector<16x1xf32> to vector<16x512xf32>
    %130 = arith.addf %127, %129 : vector<16x512xf32>
    %131 = arith.addf %130, %0 : vector<16x512xf32>
    %cst_92 = arith.constant 0.000000e+00 : f32
    %132 = vector.broadcast %cst_92 : f32 to vector<16x512xf32>
    %133 = arith.maximumf %131, %132 : vector<16x512xf32>
    %c0_93 = arith.constant 0 : index
    %c0_94 = arith.constant 0 : index
    %134 = vector.load %arg7[%c0_93, %c0_94] : memref<16x512xf32, #tpu.memory_space<vmem>>, vector<16x512xf32>
    tpu.vector_store %arg7[%c0_93, %c0_94], %133 {strides = array<i32>} : memref<16x512xf32, #tpu.memory_space<vmem>>, vector<16x512xf32>,
    return
  }
  func.func @transform_0(%arg0: i32) -> (i32, i32) {
    %c0_i32 = arith.constant 0 : i32
    %c0_i32_0 = arith.constant 0 : i32
    return %c0_i32, %arg0 : i32, i32
  }
  func.func @transform_1(%arg0: i32) -> (i32, i32, i32) {
    %c0_i32 = arith.constant 0 : i32
    %c0_i32_0 = arith.constant 0 : i32
    %c0_i32_1 = arith.constant 0 : i32
    %c0_i32_2 = arith.constant 0 : i32
    return %c0_i32, %c0_i32_0, %c0_i32_1 : i32, i32, i32
  }
  func.func @transform_2(%arg0: i32) -> (i32, i32) {
    %c0_i32 = arith.constant 0 : i32
    %c0_i32_0 = arith.constant 0 : i32
    %c0_i32_1 = arith.constant 0 : i32
    return %c0_i32, %c0_i32_0 : i32, i32
  }
  func.func @transform_3(%arg0: i32) -> (i32, i32) {
    %c0_i32 = arith.constant 0 : i32
    %c0_i32_0 = arith.constant 0 : i32
    %c0_i32_1 = arith.constant 0 : i32
    return %c0_i32, %c0_i32_0 : i32, i32
  }
  func.func @transform_4(%arg0: i32) -> (i32, i32) {
    %c0_i32 = arith.constant 0 : i32
    %c0_i32_0 = arith.constant 0 : i32
    %c0_i32_1 = arith.constant 0 : i32
    return %c0_i32, %c0_i32_0 : i32, i32
  }
  func.func @transform_5(%arg0: i32) -> (i32, i32) {
    %c0_i32 = arith.constant 0 : i32
    %c0_i32_0 = arith.constant 0 : i32
    %c0_i32_1 = arith.constant 0 : i32
    return %c0_i32, %c0_i32_0 : i32, i32
  }
  func.func @transform_6(%arg0: i32) -> (i32, i32) {
    %c0_i32 = arith.constant 0 : i32
    %c0_i32_0 = arith.constant 0 : i32
    return %c0_i32, %arg0 : i32, i32
  }
}

</mosaic_0001>

<bundles_post_ra>
// kernel: tpu_custom_call.1
= control target key start
LH: loop header
LB: loop body
LE: loop exit
PB: predicated region body
PF: predicated region fallthrough
CT: control target
= control target key end

     0   :  { %11 = vsyncpa [#allocation4], 0  ;;  %s3206_s0 = inlined_call_operand.hbm [shape: f32[16,1024], index: 0, kind: input, shape index: {}]   ;;  %s3207_s1 = inlined_call_operand.vmem [shape: f32[9,1,512], index: 1, kind: input, shape index: {}]   ;;  %s3208_s2 = inlined_call_operand.hbm [shape: bf16[16,144], index: 2, kind: input, shape index: {}]   ;;  %s3209_s3 = inlined_call_operand.hbm [shape: bf16[16,144], index: 3, kind: input, shape index: {}]   ;;  %s3210_s4 = inlined_call_operand.vmem [shape: f32[16,1], index: 4, kind: input, shape index: {}]   ;;  %s3211_s5 = inlined_call_operand.vmem [shape: f32[16,1], index: 5, kind: input, shape index: {}]   ;;  %s3212_s6 = inlined_call_operand.hbm [shape: f32[16,1024], index: 6, kind: output, shape index: {}]  }
   0x1   :  { %13 = vsyncpa [#allocation4 + $0x1], 0 }
   0x2   :  { %14 = vsyncpa [#allocation7], 0 }
   0x3   :  { %15 = vsyncpa [#allocation5], 0 }
   0x4   :  { %17 = vsyncpa [#allocation5 + $0x1], 0  ;;  %s2126_s21 = smov 0   ;;  %s2128_s22 = smov 0  }
   0x5   :  { %s2130_s23 = smov 0   ;;  %s2132_s24 = smov 0  }
   0x6 LB: > { %s2147_s25 = sadd.s32 4294967295, %s2068_s24   ;;  %s1770_s26 = sadd.s32 4294967294, %s2068_s24   ;;  %s2068_s24 = sphi %s2132_s24, %s3245_s24   ;;  %s2064_s23 = sphi %s2130_s23, %s3244_s23   ;;  %s2060_s22 = sphi %s2128_s22, %s3243_s22   ;;  %s2056_s21 = sphi %s2126_s21, %s3242_s21  }
   0x7   : > { %s2151_s27 = sadd.s32 1, %s2068_s24   ;;  %s30_s28 = sadd.s32 1, %s2064_s23 }
   0x8   : > { %s27_s29 = ssub.s32 %s2068_s24, %s2151_s27  ;;  %p37_p0 = scmp.ne.s32.totalorder %s2064_s23, %s2060_s22 }
   0x9   : > { %p28_p1 = scmp.eq.s32.totalorder %s27_s29, 0  ;;  %p38_p2 = scmp.eq.s32.totalorder %s2068_s24, 0 }
   0xa   : > { %p43_p3 = scmp.ne.s32.totalorder %s2060_s22, %s2056_s21  ;;  %p3213_p4 = scmp.eq.s32.totalorder %s2147_s25, 0 }
   0xb   : > { %s2163_s30 = scalar_select %p28_p1, %s2064_s23, %s30_s28  }
   0xc   : > { %p2165_p5 = por %p38_p2, %p37_p0  ;;  %p2171_p6 = por %p3213_p4, %p43_p3 }
   0xd   : > { %3219 = sst [smem:[#allocation13_spill]] %s2163_s30  ;;  %p172_p7 = scmp.eq.s32.totalorder %s2147_s25, 1 }
   0xe   : > { %s3220_s7 = scalar_select %p2165_p5, 1, 0 }
   0xf   : > { %s3221_s8 = scalar_select %p2171_p6, 1, 0 }
  0x10   : > { %p178_p8 = scmp.eq.s32.totalorder %s1770_s26, 1  ;;  %p1771_p9 = scmp.ge.s32.totalorder %s2068_s24, 1 }
  0x11   : > { %p185_p10 = scmp.lt.s32.totalorder %s2068_s24, 3  ;;  %p2178_p11 = por %p172_p7, %p37_p0 }
  0x12   : > { %p2182_p12 = por %p178_p8, %p43_p3  ;;  %s2070_s12 = smov [#allocation6]  }
  0x13   : > { %s3222_s9 = scalar_select %p2178_p11, 1, 0 }
  0x14   : > { %s3223_s10 = scalar_select %p2182_p12, 1, 0 }
  0x15   : > { %p2186_p13 = pnand %p1771_p9, %p185_p10  ;;  %s200_s13 = sshll.u32 %s2070_s12, 4  ;;  %s201_s13 = int_to_ptr.vmem [resolvable:$true] %s200_s13 }
  0x16   : > { %s2071_s15 = smov [#allocation8]   ;;  %s1912_s19 = scalar_lea.hbm %s3208_s2, 256 }
  0x17   : > { %s3224_s11 = scalar_select %p2186_p13, 1, 0 }
  0x18   : > { %p1824_p1 = pneg %p2186_p13  ;;  %s213_s16 = sshll.u32 %s2071_s15, 4  ;;  %s214_s16 = int_to_ptr.vmem [resolvable:$true] %s213_s16 }
  0x19   : > { %p1913_p7 = scmp.ne.s32.totalorder %s3208_s2, %s1912_s19 }
  0x1a   : > { %p2194_p2 = pnand %p1824_p1, %p3213_p4  ;;  %p1919_p1 = scmp.lt.u32.totalorder %s1912_s19, %s3208_s2 }
  0x1c   : > { %p1914_p8 = pneg %p2194_p2 }
  0x1e   : > { %p1915_p9 = pnand %p1914_p8, %p1913_p7 }
  0x20   : > { %p1916_p10 = pneg %p1915_p9 }
  0x22   : > { %p1921_p0 = pnand %p1919_p1, %p1916_p10 }
  0x24   : > { %1924 = shalt.err (!%p1921_p0)
}
  0x25   : > { %s1925_s12 = scalar_lea.vmem %s201_s13, 256  ;;  %p1933_p11 = scmp.lt.s32.totalorder %s201_s13, %s201_s13 }
  0x26   : > { %p1926_p4 = scmp.ne.s32.totalorder %s201_s13, %s1925_s12  ;;  %p1934_p6 = scmp.lt.s32.totalorder %s1925_s12, %s1925_s12 }
  0x28   : > { %p1928_p3 = pnand %p1926_p4, %p1914_p8  ;;  %p1935_p13 = por %p1934_p6, %p1933_p11 }
  0x2a   : > { %p1929_p12 = pneg %p1928_p3 }
  0x2c   : > { %p1936_p5 = pnand %p1935_p13, %p1929_p12 }
  0x2e   : > { %1939 = shalt.err (!%p1936_p5)
}
  0x2f   : > { %s2072_s15 = smov 128   ;;  %s2073_s17 = smov 8  }
  0x30   : > { %1827 = dma.hbm_to_vmem [thread:$0]  (!%p2194_p2), %s3208_s2, 256, %s201_s13, [#allocation7], %s2072_s15, %s2072_s15, %s2073_s17  }
  0x31   : > { %p3226_p0 = scmp.ne.s32.totalorder %s3220_s7, 0  ;;  %p3227_p7 = scmp.lt.s32.totalorder %s2068_s24, 2 }
  0x32   : > { %s1940_s29 = scalar_lea.hbm %s3209_s3, 256 }
  0x33   : > { %p2226_p4 = pnand %p3227_p7, %p3226_p0  ;;  %p1941_p5 = scmp.ne.s32.totalorder %s3209_s3, %s1940_s29 }
  0x34   : > { %p1947_p12 = scmp.lt.u32.totalorder %s1940_s29, %s3209_s3 }
  0x35   : > { %s3228_s20 = scalar_select %p2226_p4, 1, 0 }
  0x36   : > { %p1943_p6 = pnand %p1941_p5, %p1914_p8 }
  0x38   : > { %p1944_p11 = pneg %p1943_p6 }
  0x3a   : > { %p1949_p13 = pnand %p1947_p12, %p1944_p11 }
  0x3c   : > { %1952 = shalt.err (!%p1949_p13)
}
  0x3d   : > { %s1953_s18 = scalar_lea.vmem %s214_s16, 256  ;;  %p1961_p1 = scmp.lt.s32.totalorder %s214_s16, %s214_s16 }
  0x3e   : > { %p1954_p3 = scmp.ne.s32.totalorder %s214_s16, %s1953_s18  ;;  %p1962_p0 = scmp.lt.s32.totalorder %s1953_s18, %s1953_s18 }
  0x40   : > { %p1956_p9 = pnand %p1954_p3, %p1914_p8  ;;  %p1963_p7 = por %p1962_p0, %p1961_p1 }
  0x42   : > { %p1957_p10 = pneg %p1956_p9 }
  0x44   : > { %p1964_p4 = pnand %p1963_p7, %p1957_p10 }
  0x46   : > { %1967 = shalt.err (!%p1964_p4)
}
  0x47   : > { %1830 = dma.hbm_to_vmem [thread:$0]  (!%p2194_p2), %s3209_s3, 256, %s214_s16, [#allocation7], %s2072_s15, %s2072_s15, %s2073_s17  }
  0x48   : > { %s233_s26 = sand.u32 1, %s2064_s23   ;;  %s1810_s29 = sshll.u32 %s2068_s24, 9 }
  0x49   : > { %s1775_s28 = sshll.u32 %s233_s26, 6  ;;  %s2255_s7 = scalar_lea.hbm %s3206_s0, %s1810_s29 }
  0x4a   : > { %s237_s14 = scalar_lea.vmem [#allocation3], %s1775_s28  ;;  %s2259_s30 = scalar_lea.sflag [#allocation4], %s233_s26 }
  0x4b   : > { %s244_s18 = sshll.u32 %s237_s14, 4  ;;  %s1968_s19 = scalar_lea.hbm %s2255_s7, 1024  ;;  %s2257_s18 = int_to_ptr.vmem [resolvable:$true] %s244_s18 }
  0x4c   : > { %p1969_p2 = scmp.ne.s32.totalorder %s2255_s7, %s1968_s19  ;;  %p3229_p8 = scmp.ne.s32.totalorder %s3228_s20, 0 }
  0x4d   : > { %s1973_s17 = scalar_lea.hbm %s3206_s0, 2048  ;;  %p1974_p11 = scmp.lt.u32.totalorder %s2255_s7, %s3206_s0 }
  0x4e   : > { %p1970_p4 = pneg %p3229_p8  ;;  %p1975_p12 = scmp.lt.u32.totalorder %s1973_s17, %s1968_s19 }
  0x4f   : > { %p1977_p3 = scmp.lt.u32.totalorder %s1968_s19, %s2255_s7 }
  0x50   : > { %p1971_p5 = pnand %p1970_p4, %p1969_p2  ;;  %p1976_p13 = por %p1975_p12, %p1974_p11 }
  0x52   : > { %p1972_p6 = pneg %p1971_p5  ;;  %p1978_p9 = por %p1977_p3, %p1976_p13 }
  0x54   : > { %p1979_p10 = pnand %p1978_p9, %p1972_p6 }
  0x56   : > { %1982 = shalt.err (!%p1979_p10)
}
  0x57   : > { %s1983_s26 = scalar_lea.vmem %s2257_s18, 1024  ;;  %s2074_s28 = smov [#allocation3]  }
  0x58   : > { %p1984_p1 = scmp.ne.s32.totalorder %s2257_s18, %s1983_s26  ;;  %s1988_s13 = sshll.u32 %s2074_s28, 4  ;;  %s1989_s13 = int_to_ptr.vmem [resolvable:$false] %s1988_s13 }
  0x59   : > { %s1990_s14 = scalar_lea.vmem %s1989_s13, 2048  ;;  %p1991_p2 = scmp.lt.s32.totalorder %s2257_s18, %s1989_s13 }
  0x5a   : > { %p1986_p0 = pnand %p1984_p1, %p1970_p4  ;;  %p1992_p5 = scmp.lt.s32.totalorder %s1990_s14, %s1983_s26 }
  0x5c   : > { %p1987_p7 = pneg %p1986_p0  ;;  %p1993_p11 = por %p1992_p5, %p1991_p2 }
  0x5e   : > { %p1994_p12 = pnand %p1993_p11, %p1987_p7 }
  0x60   : > { %1997 = shalt.err (!%p1994_p12)
}
  0x61   : > { %s2075_s19 = smov 1024   ;;  %s2076_s16 = smov 512  }
  0x62   : > { %s2077_s15 = smov 32   ;;  %p3230_p4 = scmp.ne.s32.totalorder %s3224_s11, 0 }
  0x63   : > { %1834 = dma.hbm_to_vmem [thread:$0]  (!%p3229_p8), %s2255_s7, 1024, %s2257_s18, %s2259_s30, %s2075_s19, %s2076_s16, %s2077_s15  }
  0x64   : > { %256 = sbr.rel (%p3230_p4) target bundleno = 1062 (0x426), region = 44 }
  0x6b   : > { %s2290_s17 = sand.u32 1, %s2060_s22   ;;  %p3231_p6 = scmp.ne.s32.totalorder %s3221_s8, 0 }
  0x6c   : > { %s1779_s29 = sshll.u32 %s2290_s17, 6  ;;  %s259_s12 = scalar_lea.sflag [#allocation4], %s2290_s17 }
  0x6d   : > { %s2296_s26 = scalar_lea.vmem [#allocation3], %s1779_s29 }
  0x6e   : > { %2043 = dma.done.wait (%p3231_p6), %s259_s12, 1024  }
  0x6f   : > { %2045 = vsyncadd (%p3231_p6), %s259_s12, 4294966272  ;;  %p3232_p8 = scmp.eq.s32.totalorder %s2147_s25, 0 }
  0x71   : > { %2047 = dma.done.wait (%p3232_p8), [#allocation7], 512   ;;  %p3233_p13 = pmov %p3232_p8 }
  0x72   : > { %v2307_v0 = vld [vmem:[%s2296_s26 + $0x8] sm:$0xff]  ;;  %v2310_v1 = vld [vmem:[%s2296_s26] sm:$0xff]  ;;  %s2078_s8 = smov 17   ;;  %v2327_v4 = vld [vmem:[%s2296_s26 + $0x30] sm:$0xff]  ;;  %s2079_s11 = smov 16   ;;  %v326_v8 = vlaneseq  ;;  %vm890_vm0 = vcmask 130048  }
  0x73   : > { %2049 = vsyncadd (%p3233_p13), [#allocation7], 4294966784  ;;  %314 = vrot.lane.b32.xlu1 %v2307_v0, %s2078_s8  ;;  %310 = vrot.lane.b32.xlu0 %v2310_v1, %s2078_s8  ;;  %v2317_v2 = vld [vmem:[%s2296_s26 + $0x28] sm:$0xff]  ;;  %v2320_v3 = vld [vmem:[%s2296_s26 + $0x20] sm:$0xff]  ;;  %s2080_s20 = smov 15   ;;  %s2081_s7 = smov 1  }
  0x74   : > { %v2330_v5 = vld [vmem:[%s2296_s26 + $0x10] sm:$0xff]  ;;  %v2337_v6 = vld [vmem:[%s2296_s26 + $0x38] sm:$0xff]  ;;  %s2082_s18 = smov 127   ;;  %s2083_s30 = smov 113   ;;  %v340_v9 = vshrl.u32 %v326_v8, 7  ;;  %v2442_v10 = vand.u32 127, %v326_v8 }
  0x75   : > { %v2340_v7 = vld [vmem:[%s2296_s26 + $0x18] sm:$0xff]  ;;  %s2084_s28 = smov 112   ;;  %s2085_s13 = smov 111   ;;  %v337_v12 = vld [vmem:[%s3207_s1] sm:$0xf]  ;;  %v2086_v26 = vmov 0  }
  0x76   : > { %v2448_v11 = vsub.s32 1, %v340_v9  ;;  %v1900_v13 = vld [vmem:[#allocation6 + $0x4] ss:$8 sps:$4 sm:$0xff]   ;;  %vm328_vm1 = vcmp.lt.s32.totalorder %v2442_v10, 17  ;;  %v2463_v20 = vsub.s32 2, %v340_v9  ;;  %v2465_v21 = vsub.s32 0, %v340_v9  ;;  %1896 = vset.pattern.permute.xlu0 %v2086_v26  ;;  %1897 = vset.pattern.permute.xlu1 %v2086_v26 }
  0x77   : > { %316 = vrot.lane.b32.xlu1 %v2317_v2, %s2078_s8  ;;  %312 = vrot.lane.b32.xlu0 %v2320_v3, %s2078_s8  ;;  %v2473_v23 = vsub.s32 3, %v340_v9  ;;  %v869_v35 = vld [vmem:[%s3210_s4] sm:$0xff]  ;;  %v870_v40 = vld [vmem:[%s3210_s4 + $0x8] sm:$0xff]  ;;  %vm391_vm2 = vcmp.lt.s32.totalorder %v2442_v10, 16  ;;  %vm455_vm3 = vcmp.lt.s32.totalorder %v2442_v10, 15  ;;  %vm519_vm4 = vcmp.lt.s32.totalorder %v2442_v10, 1 }
  0x78   : > { %1792 = vmatprep.mubr.msk.bf16.mxu0 %vm890_vm0, %v1900_v13  ;;  %1793 = vmatprep.mubr.msk.bf16.mxu1 %vm890_vm0, %v1900_v13  ;;  %v346_v16 = vrot.slane %v337_v12, %v2448_v11  ;;  %v350_v30 = vrot.slane %v337_v12, %v2463_v20  ;;  %v342_v33 = vrot.slane %v337_v12, %v2465_v21  ;;  %v1783_v49 = vld [vmem:[%s3207_s1 + $0x4] sm:$0xf]  ;;  %vm591_vm5 = vcmp.lt.s32.totalorder %v2442_v10, 127  ;;  %s1811_s19 = sshll.u32 %s2147_s25, 9  ;;  %s1665_s15 = scalar_lea.sflag [#allocation5], %s2290_s17 }
  0x79   : > { %v354_v34 = vrot.slane %v337_v12, %v2473_v23  ;;  %v410_v55 = vrot.slane %v1783_v49, %v2448_v11  ;;  %v414_v62 = vrot.slane %v1783_v49, %v2463_v20  ;;  %vm655_vm6 = vcmp.lt.s32.totalorder %v2442_v10, 113  ;;  %s3162_s25 = scalar_lea.hbm %s3212_s6, %s1811_s19  ;;  %p3238_p9 = scmp.ne.s32.totalorder %s3222_s9, 0 }
  0x7a   : > { %vm719_vm7 = vcmp.lt.s32.totalorder %v2442_v10, 112  ;;  %vm783_vm8 = vcmp.lt.s32.totalorder %v2442_v10, 111 }
  0x7b   : > { %320 = vrot.lane.b32.xlu1 %v2327_v4, %s2078_s8  ;;  %318 = vrot.lane.b32.xlu0 %v2330_v5, %s2078_s8 }
  0x7f   : > { %324 = vrot.lane.b32.xlu1 %v2337_v6, %s2078_s8  ;;  %322 = vrot.lane.b32.xlu0 %v2340_v7, %s2078_s8 }
  0x83   : > { %377 = vrot.lane.b32.xlu1 %v2320_v3, %s2079_s11  ;;  %375 = vrot.lane.b32.xlu0 %v2310_v1, %s2079_s11 }
  0x87   : > { %381 = vrot.lane.b32.xlu1 %v2317_v2, %s2079_s11  ;;  %379 = vrot.lane.b32.xlu0 %v2307_v0, %s2079_s11 }
  0x8b   : > { %385 = vrot.lane.b32.xlu1 %v2327_v4, %s2079_s11  ;;  %383 = vrot.lane.b32.xlu0 %v2330_v5, %s2079_s11 }
  0x8f   : > { %389 = vrot.lane.b32.xlu1 %v2337_v6, %s2079_s11  ;;  %387 = vrot.lane.b32.xlu0 %v2340_v7, %s2079_s11 }
  0x93   : > { %441 = vrot.lane.b32.xlu1 %v2320_v3, %s2080_s20  ;;  %439 = vrot.lane.b32.xlu0 %v2310_v1, %s2080_s20 }
  0x97   : > { %445 = vrot.lane.b32.xlu1 %v2317_v2, %s2080_s20  ;;  %443 = vrot.lane.b32.xlu0 %v2307_v0, %s2080_s20 }
  0x9b   : > { %449 = vrot.lane.b32.xlu1 %v2327_v4, %s2080_s20  ;;  %447 = vrot.lane.b32.xlu0 %v2330_v5, %s2080_s20 }
  0x9f   : > { %453 = vrot.lane.b32.xlu1 %v2337_v6, %s2080_s20  ;;  %451 = vrot.lane.b32.xlu0 %v2340_v7, %s2080_s20 }
  0xa3   : > { %505 = vrot.lane.b32.xlu1 %v2320_v3, %s2081_s7  ;;  %503 = vrot.lane.b32.xlu0 %v2310_v1, %s2081_s7 }
  0xa7   : > { %509 = vrot.lane.b32.xlu1 %v2317_v2, %s2081_s7  ;;  %507 = vrot.lane.b32.xlu0 %v2307_v0, %s2081_s7 }
  0xab   : > { %513 = vrot.lane.b32.xlu1 %v2327_v4, %s2081_s7  ;;  %511 = vrot.lane.b32.xlu0 %v2330_v5, %s2081_s7 }
  0xaf   : > { %517 = vrot.lane.b32.xlu1 %v2337_v6, %s2081_s7  ;;  %515 = vrot.lane.b32.xlu0 %v2340_v7, %s2081_s7 }
  0xb3   : > { %577 = vrot.lane.b32.xlu1 %v2320_v3, %s2082_s18  ;;  %575 = vrot.lane.b32.xlu0 %v2310_v1, %s2082_s18 }
  0xb7   : > { %581 = vrot.lane.b32.xlu1 %v2317_v2, %s2082_s18  ;;  %579 = vrot.lane.b32.xlu0 %v2307_v0, %s2082_s18 }
  0xbb   : > { %585 = vrot.lane.b32.xlu1 %v2327_v4, %s2082_s18  ;;  %583 = vrot.lane.b32.xlu0 %v2330_v5, %s2082_s18 }
  0xbf   : > { %589 = vrot.lane.b32.xlu1 %v2337_v6, %s2082_s18  ;;  %587 = vrot.lane.b32.xlu0 %v2340_v7, %s2082_s18 }
  0xc3   : > { %641 = vrot.lane.b32.xlu1 %v2320_v3, %s2083_s30  ;;  %639 = vrot.lane.b32.xlu0 %v2310_v1, %s2083_s30 }
  0xc7   : > { %645 = vrot.lane.b32.xlu1 %v2317_v2, %s2083_s30  ;;  %643 = vrot.lane.b32.xlu0 %v2307_v0, %s2083_s30 }
  0xcb   : > { %649 = vrot.lane.b32.xlu1 %v2327_v4, %s2083_s30  ;;  %647 = vrot.lane.b32.xlu0 %v2330_v5, %s2083_s30 }
  0xcf   : > { %653 = vrot.lane.b32.xlu1 %v2337_v6, %s2083_s30  ;;  %651 = vrot.lane.b32.xlu0 %v2340_v7, %s2083_s30 }
  0xd3   : > { %705 = vrot.lane.b32.xlu1 %v2320_v3, %s2084_s28  ;;  %703 = vrot.lane.b32.xlu0 %v2310_v1, %s2084_s28 }
  0xd7   : > { %709 = vrot.lane.b32.xlu1 %v2317_v2, %s2084_s28  ;;  %707 = vrot.lane.b32.xlu0 %v2307_v0, %s2084_s28 }
  0xdb   : > { %713 = vrot.lane.b32.xlu1 %v2327_v4, %s2084_s28  ;;  %711 = vrot.lane.b32.xlu0 %v2330_v5, %s2084_s28 }
  0xdf   : > { %717 = vrot.lane.b32.xlu1 %v2337_v6, %s2084_s28  ;;  %715 = vrot.lane.b32.xlu0 %v2340_v7, %s2084_s28 }
  0xe3   : > { %769 = vrot.lane.b32.xlu1 %v2320_v3, %s2085_s13  ;;  %767 = vrot.lane.b32.xlu0 %v2310_v1, %s2085_s13 }
  0xe5   : > { %v315_v14 = vpop.permute.xlu1 %314  ;;  %v311_v15 = vpop.permute.xlu0 %310 }
  0xe6   : > { %v333_v17 = vsel %vm328_vm1, %v311_v15, %v315_v14 }
  0xe7   : > { %773 = vrot.lane.b32.xlu1 %v2317_v2, %s2085_s13  ;;  %771 = vrot.lane.b32.xlu0 %v2307_v0, %s2085_s13  ;;  %v360_v24 = vmul.f32 %v346_v16, %v333_v17 }
  0xe9   : > { %v317_v18 = vpop.permute.xlu1 %316  ;;  %v313_v19 = vpop.permute.xlu0 %312 }
  0xea   : > { %v334_v22 = vsel %vm328_vm1, %v313_v19, %v317_v18 }
  0xeb   : > { %777 = vrot.lane.b32.xlu1 %v2327_v4, %s2085_s13  ;;  %775 = vrot.lane.b32.xlu0 %v2330_v5, %s2085_s13  ;;  %v364_v25 = vmul.f32 %v346_v16, %v334_v22 }
  0xed   : > { %v321_v27 = vpop.permute.xlu1 %320  ;;  %v319_v28 = vpop.permute.xlu0 %318  ;;  %v368_v29 = vpack.c.bf16 %v364_v25, %v360_v24 }
  0xee   : > { %v332_v31 = vsel %vm328_vm1, %v317_v18, %v321_v27  ;;  %v331_v32 = vsel %vm328_vm1, %v315_v14, %v319_v28  ;;  %v406_v14 = vrot.slane %v1783_v49, %v2465_v21 }
  0xef   : > { %781 = vrot.lane.b32.xlu1 %v2337_v6, %s2085_s13  ;;  %779 = vrot.lane.b32.xlu0 %v2340_v7, %s2085_s13  ;;  %v361_v38 = vmul.f32 %v350_v30, %v331_v32  ;;  %v365_v39 = vmul.f32 %v350_v30, %v332_v31  ;;  %v1784_v31 = vld [vmem:[%s3207_s1 + $0x8] sm:$0xf] }
  0xf0   : > { %894 = vmatprep.subr.bf16.mxu0 %v368_v29 }
  0xf1   : > { %v325_v36 = vpop.permute.xlu1 %324  ;;  %v323_v37 = vpop.permute.xlu0 %322  ;;  %v369_v54 = vpack.c.bf16 %v365_v39, %v361_v38 }
  0xf2   : > { %v336_v41 = vsel %vm328_vm1, %v325_v36, %v313_v19  ;;  %v335_v42 = vsel %vm328_vm1, %v323_v37, %v311_v15  ;;  %v329_v43 = vsel %vm328_vm1, %v319_v28, %v323_v37  ;;  %v330_v44 = vsel %vm328_vm1, %v321_v27, %v325_v36 }
  0xf3   : > { %v359_v45 = vmul.f32 %v342_v33, %v335_v42  ;;  %v363_v46 = vmul.f32 %v342_v33, %v336_v41  ;;  %v362_v47 = vmul.f32 %v354_v34, %v329_v43  ;;  %v366_v48 = vmul.f32 %v354_v34, %v330_v44  ;;  %873 = vperm.xlu0 %1896, %v869_v35  }
  0xf4   : > { %878 = vperm.xlu1 %1897, %v870_v40   ;;  %v418_v15 = vrot.slane %v1783_v49, %v2473_v23  ;;  %v474_v37 = vrot.slane %v1784_v31, %v2448_v11  ;;  %v478_v44 = vrot.slane %v1784_v31, %v2463_v20 }
  0xf5   : > { %v378_v50 = vpop.permute.xlu1 %377  ;;  %v376_v51 = vpop.permute.xlu0 %375  ;;  %v367_v52 = vpack.c.bf16 %v363_v46, %v359_v45  ;;  %v370_v53 = vpack.c.bf16 %v366_v48, %v362_v47 }
  0xf7   : > { %895 = vmatpush1.bf16.msra.mxu0 %v367_v52  ;;  %937 = vmatprep.subr.bf16.mxu1 %v370_v53 }
  0xf8   : > { %938 = vmatpush1.bf16.msra.mxu1 %v369_v54 }
  0xf9   : > { %v382_v56 = vpop.permute.xlu1 %381  ;;  %v380_v57 = vpop.permute.xlu0 %379 }
  0xfa   : > { %v397_v58 = vsel %vm391_vm2, %v378_v50, %v382_v56  ;;  %v396_v59 = vsel %vm391_vm2, %v376_v51, %v380_v57 }
  0xfb   : > { %v428_v60 = vmul.f32 %v410_v55, %v397_v58  ;;  %v424_v61 = vmul.f32 %v410_v55, %v396_v59 }
  0xfd   : > { %v386_v63 = vpop.permute.xlu1 %385  ;;  %v384_v8 = vpop.permute.xlu0 %383  ;;  %v432_v9 = vpack.c.bf16 %v428_v60, %v424_v61 }
  0xfe   : > { %v395_v12 = vsel %vm391_vm2, %v382_v56, %v386_v63  ;;  %v394_v13 = vsel %vm391_vm2, %v380_v57, %v384_v8 }
  0xff   : > { %896 = vmatprep.subr.bf16.mxu0 %v432_v9  ;;  %v429_v16 = vmul.f32 %v414_v62, %v395_v12  ;;  %v425_v17 = vmul.f32 %v414_v62, %v394_v13 }
 0x101   : > { %v390_v18 = vpop.permute.xlu1 %389  ;;  %v388_v19 = vpop.permute.xlu0 %387  ;;  %v433_v36 = vpack.c.bf16 %v429_v16, %v425_v17 }
 0x102   : > { %v393_v22 = vsel %vm391_vm2, %v386_v63, %v390_v18  ;;  %v399_v24 = vsel %vm391_vm2, %v390_v18, %v378_v50  ;;  %v392_v25 = vsel %vm391_vm2, %v384_v8, %v388_v19  ;;  %v398_v26 = vsel %vm391_vm2, %v388_v19, %v376_v51  ;;  %v1785_v8 = vld [vmem:[%s3207_s1 + $0xc] sm:$0xf] }
 0x103   : > { %v427_v27 = vmul.f32 %v406_v14, %v399_v24  ;;  %v430_v28 = vmul.f32 %v418_v15, %v393_v22  ;;  %v423_v29 = vmul.f32 %v406_v14, %v398_v26  ;;  %v426_v30 = vmul.f32 %v418_v15, %v392_v25 }
 0x104   : > { %v470_v50 = vrot.slane %v1784_v31, %v2465_v21  ;;  %v482_v51 = vrot.slane %v1784_v31, %v2473_v23  ;;  %v538_v16 = vrot.slane %v1785_v8, %v2448_v11  ;;  %v542_v26 = vrot.slane %v1785_v8, %v2463_v20 }
 0x105   : > { %v442_v32 = vpop.permute.xlu1 %441  ;;  %v440_v33 = vpop.permute.xlu0 %439  ;;  %v431_v34 = vpack.c.bf16 %v427_v27, %v423_v29  ;;  %v434_v35 = vpack.c.bf16 %v430_v28, %v426_v30 }
 0x107   : > { %897 = vmatpush1.bf16.msra.mxu0 %v431_v34  ;;  %939 = vmatprep.subr.bf16.mxu1 %v434_v35 }
 0x108   : > { %940 = vmatpush1.bf16.msra.mxu1 %v433_v36 }
 0x109   : > { %v446_v38 = vpop.permute.xlu1 %445  ;;  %v444_v39 = vpop.permute.xlu0 %443 }
 0x10a   : > { %v461_v40 = vsel %vm455_vm3, %v442_v32, %v446_v38  ;;  %v460_v41 = vsel %vm455_vm3, %v440_v33, %v444_v39 }
 0x10b   : > { %v492_v42 = vmul.f32 %v474_v37, %v461_v40  ;;  %v488_v43 = vmul.f32 %v474_v37, %v460_v41 }
 0x10d   : > { %v450_v45 = vpop.permute.xlu1 %449  ;;  %v448_v46 = vpop.permute.xlu0 %447  ;;  %v496_v47 = vpack.c.bf16 %v492_v42, %v488_v43 }
 0x10e   : > { %v459_v48 = vsel %vm455_vm3, %v446_v38, %v450_v45  ;;  %v458_v49 = vsel %vm455_vm3, %v444_v39, %v448_v46 }
 0x10f   : > { %898 = vmatprep.subr.bf16.mxu0 %v496_v47  ;;  %v493_v52 = vmul.f32 %v478_v44, %v459_v48  ;;  %v489_v53 = vmul.f32 %v478_v44, %v458_v49 }
 0x111   : > { %v454_v54 = vpop.permute.xlu1 %453  ;;  %v452_v55 = vpop.permute.xlu0 %451  ;;  %v497_v15 = vpack.c.bf16 %v493_v52, %v489_v53  ;;  %v1786_v53 = vld [vmem:[%s3207_s1 + $0x14] sm:$0xf] }
 0x112   : > { %v457_v56 = vsel %vm455_vm3, %v450_v45, %v454_v54  ;;  %v463_v57 = vsel %vm455_vm3, %v454_v54, %v442_v32  ;;  %v456_v58 = vsel %vm455_vm3, %v448_v46, %v452_v55  ;;  %v462_v59 = vsel %vm455_vm3, %v452_v55, %v440_v33 }
 0x113   : > { %v491_v60 = vmul.f32 %v470_v50, %v463_v57  ;;  %v494_v61 = vmul.f32 %v482_v51, %v457_v56  ;;  %v487_v62 = vmul.f32 %v470_v50, %v462_v59  ;;  %v490_v63 = vmul.f32 %v482_v51, %v456_v58 }
 0x114   : > { %v534_v32 = vrot.slane %v1785_v8, %v2465_v21  ;;  %v546_v33 = vrot.slane %v1785_v8, %v2473_v23  ;;  %v568_v46 = vpack.c.bf16 %v2317_v2, %v2307_v0  ;;  %v570_v51 = vpack.c.bf16 %v2337_v6, %v2340_v7 }
 0x115   : > { %v506_v9 = vpop.permute.xlu1 %505  ;;  %v504_v12 = vpop.permute.xlu0 %503  ;;  %v495_v13 = vpack.c.bf16 %v491_v60, %v487_v62  ;;  %v498_v14 = vpack.c.bf16 %v494_v61, %v490_v63  ;;  %v567_v54 = vpack.c.bf16 %v2320_v3, %v2310_v1  ;;  %v569_v0 = vpack.c.bf16 %v2327_v4, %v2330_v5 }
 0x116   : > { %v606_v2 = vrot.slane %v1786_v53, %v2465_v21  ;;  %v610_v57 = vrot.slane %v1786_v53, %v2448_v11  ;;  %v614_v62 = vrot.slane %v1786_v53, %v2463_v20  ;;  %v618_v63 = vrot.slane %v1786_v53, %v2473_v23 }
 0x117   : > { %899 = vmatpush1.bf16.msra.mxu0 %v495_v13  ;;  %941 = vmatprep.subr.bf16.mxu1 %v498_v14 }
 0x118   : > { %942 = vmatpush1.bf16.msra.mxu1 %v497_v15 }
 0x119   : > { %v510_v17 = vpop.permute.xlu1 %509  ;;  %v508_v18 = vpop.permute.xlu0 %507 }
 0x11a   : > { %v525_v19 = vsel %vm519_vm4, %v506_v9, %v510_v17  ;;  %v524_v22 = vsel %vm519_vm4, %v504_v12, %v508_v18 }
 0x11b   : > { %v556_v24 = vmul.f32 %v538_v16, %v525_v19  ;;  %v552_v25 = vmul.f32 %v538_v16, %v524_v22 }
 0x11d   : > { %v514_v27 = vpop.permute.xlu1 %513  ;;  %v512_v28 = vpop.permute.xlu0 %511  ;;  %v560_v29 = vpack.c.bf16 %v556_v24, %v552_v25 }
 0x11e   : > { %v523_v30 = vsel %vm519_vm4, %v510_v17, %v514_v27  ;;  %v522_v31 = vsel %vm519_vm4, %v508_v18, %v512_v28 }
 0x11f   : > { %900 = vmatprep.subr.bf16.mxu0 %v560_v29  ;;  %v557_v34 = vmul.f32 %v542_v26, %v523_v30  ;;  %v553_v35 = vmul.f32 %v542_v26, %v522_v31  ;;  %v1787_v29 = vld [vmem:[%s3207_s1 + $0x18] sm:$0xf] }
 0x120   : > { %v670_v30 = vrot.slane %v1787_v29, %v2465_v21 }
 0x121   : > { %v518_v36 = vpop.permute.xlu1 %517  ;;  %v516_v37 = vpop.permute.xlu0 %515  ;;  %v561_v52 = vpack.c.bf16 %v557_v34, %v553_v35  ;;  %v674_v35 = vrot.slane %v1787_v29, %v2448_v11 }
 0x122   : > { %v521_v38 = vsel %vm519_vm4, %v514_v27, %v518_v36  ;;  %v527_v39 = vsel %vm519_vm4, %v518_v36, %v506_v9  ;;  %v520_v40 = vsel %vm519_vm4, %v512_v28, %v516_v37  ;;  %v526_v41 = vsel %vm519_vm4, %v516_v37, %v504_v12 }
 0x123   : > { %v555_v42 = vmul.f32 %v534_v32, %v527_v39  ;;  %v558_v43 = vmul.f32 %v546_v33, %v521_v38  ;;  %v551_v44 = vmul.f32 %v534_v32, %v526_v41  ;;  %v554_v45 = vmul.f32 %v546_v33, %v520_v40 }
 0x125   : > { %v578_v47 = vpop.permute.xlu1 %577  ;;  %v576_v48 = vpop.permute.xlu0 %575  ;;  %v559_v49 = vpack.c.bf16 %v555_v42, %v551_v44  ;;  %v562_v50 = vpack.c.bf16 %v558_v43, %v554_v45  ;;  %v678_v44 = vrot.slane %v1787_v29, %v2463_v20  ;;  %v682_v45 = vrot.slane %v1787_v29, %v2473_v23 }
 0x127   : > { %901 = vmatpush1.bf16.msra.mxu0 %v559_v49  ;;  %943 = vmatprep.subr.bf16.mxu1 %v562_v50 }
 0x128   : > { %944 = vmatpush1.bf16.msra.mxu1 %v561_v52  ;;  %902 = vmatprep.subr.bf16.mxu0 %v568_v46 }
 0x129   : > { %v582_v6 = vpop.permute.xlu1 %581  ;;  %v580_v7 = vpop.permute.xlu0 %579  ;;  %945 = vmatprep.subr.bf16.mxu1 %v570_v51 }
 0x12a   : > { %v597_v55 = vsel %vm591_vm5, %v578_v47, %v582_v6  ;;  %v596_v56 = vsel %vm591_vm5, %v576_v48, %v580_v7 }
 0x12b   : > { %903 = vmatpush1.bf16.msra.mxu0 %v567_v54  ;;  %v627_v1 = vmul.f32 %v606_v2, %v597_v55  ;;  %v623_v3 = vmul.f32 %v606_v2, %v596_v56 }
 0x12c   : > { %946 = vmatpush1.bf16.msra.mxu1 %v569_v0 }
 0x12d   : > { %v586_v58 = vpop.permute.xlu1 %585  ;;  %v584_v59 = vpop.permute.xlu0 %583  ;;  %v631_v13 = vpack.c.bf16 %v627_v1, %v623_v3  ;;  %v1788_v1 = vld [vmem:[%s3207_s1 + $0x1c] sm:$0xf] }
 0x12e   : > { %v595_v4 = vsel %vm591_vm5, %v582_v6, %v586_v58  ;;  %v594_v5 = vsel %vm591_vm5, %v580_v7, %v584_v59  ;;  %v734_v3 = vrot.slane %v1788_v1, %v2465_v21 }
 0x12f   : > { %v628_v60 = vmul.f32 %v610_v57, %v595_v4  ;;  %v624_v61 = vmul.f32 %v610_v57, %v594_v5 }
 0x131   : > { %v590_v8 = vpop.permute.xlu1 %589  ;;  %v588_v9 = vpop.permute.xlu0 %587  ;;  %v632_v12 = vpack.c.bf16 %v628_v60, %v624_v61  ;;  %v738_v60 = vrot.slane %v1788_v1, %v2448_v11 }
 0x132   : > { %v593_v14 = vsel %vm591_vm5, %v586_v58, %v590_v8  ;;  %v599_v15 = vsel %vm591_vm5, %v590_v8, %v578_v47  ;;  %v592_v16 = vsel %vm591_vm5, %v584_v59, %v588_v9  ;;  %v598_v17 = vsel %vm591_vm5, %v588_v9, %v576_v48 }
 0x133   : > { %v629_v18 = vmul.f32 %v614_v62, %v593_v14  ;;  %v630_v19 = vmul.f32 %v618_v63, %v599_v15  ;;  %v625_v22 = vmul.f32 %v614_v62, %v592_v16  ;;  %v626_v24 = vmul.f32 %v618_v63, %v598_v17  ;;  %904 = vmatprep.subr.bf16.mxu0 %v632_v12 }
 0x134   : > { %905 = vmatpush1.bf16.msra.mxu0 %v631_v13  ;;  %v742_v15 = vrot.slane %v1788_v1, %v2463_v20  ;;  %v746_v16 = vrot.slane %v1788_v1, %v2473_v23 }
 0x135   : > { %v642_v25 = vpop.permute.xlu1 %641  ;;  %v640_v26 = vpop.permute.xlu0 %639  ;;  %v634_v27 = vpack.c.bf16 %v630_v19, %v626_v24  ;;  %v633_v28 = vpack.c.bf16 %v629_v18, %v625_v22 }
 0x137   : > { %947 = vmatprep.subr.bf16.mxu1 %v634_v27 }
 0x138   : > { %948 = vmatpush1.bf16.msra.mxu1 %v633_v28 }
 0x139   : > { %v646_v31 = vpop.permute.xlu1 %645  ;;  %v644_v32 = vpop.permute.xlu0 %643 }
 0x13a   : > { %v661_v33 = vsel %vm655_vm6, %v642_v25, %v646_v31  ;;  %v660_v34 = vsel %vm655_vm6, %v640_v26, %v644_v32 }
 0x13b   : > { %v691_v36 = vmul.f32 %v670_v30, %v661_v33  ;;  %v687_v37 = vmul.f32 %v670_v30, %v660_v34 }
 0x13d   : > { %v650_v38 = vpop.permute.xlu1 %649  ;;  %v648_v39 = vpop.permute.xlu0 %647  ;;  %v695_v49 = vpack.c.bf16 %v691_v36, %v687_v37  ;;  %v1789_v36 = vld [vmem:[%s3207_s1 + $0x20] sm:$0xf] }
 0x13e   : > { %v659_v40 = vsel %vm655_vm6, %v646_v31, %v650_v38  ;;  %v658_v41 = vsel %vm655_vm6, %v644_v32, %v648_v39  ;;  %v798_v37 = vrot.slane %v1789_v36, %v2465_v21 }
 0x13f   : > { %v692_v42 = vmul.f32 %v674_v35, %v659_v40  ;;  %v688_v43 = vmul.f32 %v674_v35, %v658_v41 }
 0x141   : > { %v654_v46 = vpop.permute.xlu1 %653  ;;  %v652_v47 = vpop.permute.xlu0 %651  ;;  %v696_v48 = vpack.c.bf16 %v692_v42, %v688_v43  ;;  %v802_v42 = vrot.slane %v1789_v36, %v2448_v11 }
 0x142   : > { %v657_v50 = vsel %vm655_vm6, %v650_v38, %v654_v46  ;;  %v663_v51 = vsel %vm655_vm6, %v654_v46, %v642_v25  ;;  %v656_v52 = vsel %vm655_vm6, %v648_v39, %v652_v47  ;;  %v662_v53 = vsel %vm655_vm6, %v652_v47, %v640_v26 }
 0x143   : > { %v693_v54 = vmul.f32 %v678_v44, %v657_v50  ;;  %v694_v0 = vmul.f32 %v682_v45, %v663_v51  ;;  %v689_v2 = vmul.f32 %v678_v44, %v656_v52  ;;  %v690_v6 = vmul.f32 %v682_v45, %v662_v53  ;;  %906 = vmatprep.subr.bf16.mxu0 %v696_v48 }
 0x144   : > { %907 = vmatpush1.bf16.msra.mxu0 %v695_v49  ;;  %v806_v51 = vrot.slane %v1789_v36, %v2463_v20  ;;  %v810_v52 = vrot.slane %v1789_v36, %v2473_v23 }
 0x145   : > { %v706_v7 = vpop.permute.xlu1 %705  ;;  %v704_v55 = vpop.permute.xlu0 %703  ;;  %v698_v56 = vpack.c.bf16 %v694_v0, %v690_v6  ;;  %v697_v57 = vpack.c.bf16 %v693_v54, %v689_v2 }
 0x147   : > { %949 = vmatprep.subr.bf16.mxu1 %v698_v56 }
 0x148   : > { %950 = vmatpush1.bf16.msra.mxu1 %v697_v57 }
 0x149   : > { %v710_v58 = vpop.permute.xlu1 %709  ;;  %v708_v59 = vpop.permute.xlu0 %707 }
 0x14a   : > { %v725_v4 = vsel %vm719_vm7, %v706_v7, %v710_v58  ;;  %v724_v5 = vsel %vm719_vm7, %v704_v55, %v708_v59 }
 0x14b   : > { %v755_v61 = vmul.f32 %v734_v3, %v725_v4  ;;  %v751_v62 = vmul.f32 %v734_v3, %v724_v5 }
 0x14d   : > { %v714_v63 = vpop.permute.xlu1 %713  ;;  %v712_v8 = vpop.permute.xlu0 %711  ;;  %v759_v22 = vpack.c.bf16 %v755_v61, %v751_v62 }
 0x14e   : > { %v723_v9 = vsel %vm719_vm7, %v710_v58, %v714_v63  ;;  %v722_v12 = vsel %vm719_vm7, %v708_v59, %v712_v8  ;;  %v1898_v59 = vld [vmem:[#allocation6] ss:$8 sps:$4 sm:$0xff]  }
 0x14f   : > { %v756_v13 = vmul.f32 %v738_v60, %v723_v9  ;;  %v752_v14 = vmul.f32 %v738_v60, %v722_v12 }
 0x151   : > { %v718_v17 = vpop.permute.xlu1 %717  ;;  %v716_v18 = vpop.permute.xlu0 %715  ;;  %v760_v19 = vpack.c.bf16 %v756_v13, %v752_v14 }
 0x152   : > { %v721_v24 = vsel %vm719_vm7, %v714_v63, %v718_v17  ;;  %v727_v25 = vsel %vm719_vm7, %v718_v17, %v706_v7  ;;  %v720_v26 = vsel %vm719_vm7, %v712_v8, %v716_v18  ;;  %v726_v27 = vsel %vm719_vm7, %v716_v18, %v704_v55 }
 0x153   : > { %v757_v28 = vmul.f32 %v742_v15, %v721_v24  ;;  %v758_v29 = vmul.f32 %v746_v16, %v727_v25  ;;  %v753_v30 = vmul.f32 %v742_v15, %v720_v26  ;;  %v754_v31 = vmul.f32 %v746_v16, %v726_v27  ;;  %908 = vmatprep.subr.bf16.mxu0 %v760_v19 }
 0x154   : > { %909 = vmatpush1.bf16.msra.mxu0 %v759_v22 }
 0x155   : > { %v770_v32 = vpop.permute.xlu1 %769  ;;  %v768_v33 = vpop.permute.xlu0 %767  ;;  %v762_v34 = vpack.c.bf16 %v758_v29, %v754_v31  ;;  %v761_v35 = vpack.c.bf16 %v757_v28, %v753_v30 }
 0x157   : > { %951 = vmatprep.subr.bf16.mxu1 %v762_v34 }
 0x158   : > { %952 = vmatpush1.bf16.msra.mxu1 %v761_v35 }
 0x159   : > { %v774_v38 = vpop.permute.xlu1 %773  ;;  %v772_v39 = vpop.permute.xlu0 %771 }
 0x15a   : > { %v789_v40 = vsel %vm783_vm8, %v770_v32, %v774_v38  ;;  %v788_v41 = vsel %vm783_vm8, %v768_v33, %v772_v39 }
 0x15b   : > { %v819_v43 = vmul.f32 %v798_v37, %v789_v40  ;;  %v815_v44 = vmul.f32 %v798_v37, %v788_v41 }
 0x15d   : > { %v778_v45 = vpop.permute.xlu1 %777  ;;  %v776_v46 = vpop.permute.xlu0 %775  ;;  %v823_v2 = vpack.c.bf16 %v819_v43, %v815_v44  ;;  %v1530_v44 = vld [vmem:[%s3211_s5] sm:$0xff] }
 0x15e   : > { %v787_v47 = vsel %vm783_vm8, %v774_v38, %v778_v45  ;;  %v786_v48 = vsel %vm783_vm8, %v772_v39, %v776_v46  ;;  %v1901_v39 = vld [vmem:[#allocation8 + $0x4] ss:$8 sps:$4 sm:$0xff]  }
 0x15f   : > { %v820_v49 = vmul.f32 %v802_v42, %v787_v47  ;;  %v816_v50 = vmul.f32 %v802_v42, %v786_v48 }
 0x161   : > { %v782_v53 = vpop.permute.xlu1 %781  ;;  %v780_v54 = vpop.permute.xlu0 %779  ;;  %v824_v0 = vpack.c.bf16 %v820_v49, %v816_v50 }
 0x162   : > { %v785_v6 = vsel %vm783_vm8, %v778_v45, %v782_v53  ;;  %v791_v7 = vsel %vm783_vm8, %v782_v53, %v770_v32  ;;  %v784_v55 = vsel %vm783_vm8, %v776_v46, %v780_v54  ;;  %v790_v56 = vsel %vm783_vm8, %v780_v54, %v768_v33  ;;  %v1531_v46 = vld [vmem:[%s3211_s5 + $0x8] sm:$0xff] }
 0x163   : > { %v821_v57 = vmul.f32 %v806_v51, %v785_v6  ;;  %v822_v1 = vmul.f32 %v810_v52, %v791_v7  ;;  %v817_v3 = vmul.f32 %v806_v51, %v784_v55  ;;  %v818_v58 = vmul.f32 %v810_v52, %v790_v56  ;;  %910 = vmatprep.subr.bf16.mxu0 %v824_v0 }
 0x164   : > { %911 = vmatpush1.bf16.msra.mxu0 %v823_v2 }
 0x165   : > { %v826_v4 = vpack.c.bf16 %v822_v1, %v818_v58  ;;  %v825_v5 = vpack.c.bf16 %v821_v57, %v817_v3 }
 0x167   : > { %927 = vmatmul.mubr.bf16.vlgmr.msra.gmra.mrb[0].mxu0 %v1898_v59  ;;  %953 = vmatprep.subr.bf16.mxu1 %v826_v4 }
 0x168   : > { %954 = vmatpush1.bf16.msra.mxu1 %v825_v5  ;;  %1803 = vmatprep.mubr.msk.bf16.mxu0 %vm890_vm0, %v1901_v39 }
 0x16b   : > { %970 = vmatmul.mubr.bf16.vlgmr.msra.gmra.mrb[0].mxu1 %v1898_v59 }
 0x16c   : > { %1804 = vmatprep.mubr.msk.bf16.mxu1 %vm890_vm0, %v1901_v39 }
 0x172   : > { %v874_v60 = vpop.permute.xlu0 %873 }
 0x173   : > { %v879_v62 = vpop.permute.xlu1 %878 }
 0x23a   : > { %v928_v61 = vpop.f32.mrb[0].mxu0 }
 0x23b   : > { %v929_v63 = vadd.f32 %v928_v61, %v874_v60  ;;  %v930_v8 = vpop.f32.mrb[1].mxu0 }
 0x23c   : > { %v932_v9 = vpop.f32.mrb[2].mxu0  ;;  %v931_v29 = vadd.f32 %v930_v8, %v874_v60 }
 0x23d   : > { %v2676_v12 = vmax.f32 %v929_v63, 0.0  ;;  %v933_v13 = vadd.f32 %v932_v9, %v879_v62  ;;  %v934_v14 = vpop.f32.mrb[3].mxu0  ;;  %v1012_v63 = vld [vmem:[%s3207_s1] sm:$0xf] }
 0x23e   : > { %v971_v15 = vpop.f32.mrb[0].mxu1  ;;  %v935_v30 = vadd.f32 %v934_v14, %v879_v62  ;;  %v2750_v31 = vmax.f32 %v931_v29, 0.0  ;;  %v1021_v9 = vrot.slane %v1012_v63, %v2448_v11  ;;  %v1029_v29 = vrot.slane %v1012_v63, %v2473_v23 }
 0x23f   : > { %v2678_v16 = vmax.f32 %v933_v13, 0.0  ;;  %v972_v17 = vadd.f32 %v971_v15, %v874_v60  ;;  %v973_v18 = vpop.f32.mrb[1].mxu1  ;;  %988 = vrot.lane.b32.xlu1 %v2676_v12, %s2078_s8  ;;  %v1025_v13 = vrot.slane %v1012_v63, %v2463_v20 }
 0x240   : > { %v975_v19 = vpop.f32.mrb[2].mxu1  ;;  %v974_v32 = vadd.f32 %v973_v18, %v874_v60  ;;  %v2754_v33 = vmax.f32 %v935_v30, 0.0 }
 0x241   : > { %v2682_v22 = vmax.f32 %v972_v17, 0.0  ;;  %v976_v24 = vadd.f32 %v975_v19, %v879_v62  ;;  %v977_v25 = vpop.f32.mrb[3].mxu1  ;;  %990 = vrot.lane.b32.xlu0 %v2678_v16, %s2078_s8 }
 0x242   : > { %v978_v34 = vadd.f32 %v977_v25, %v879_v62  ;;  %v2758_v35 = vmax.f32 %v974_v32, 0.0  ;;  %v1017_v25 = vrot.slane %v1012_v63, %v2465_v21 }
 0x243   : > { %v2688_v27 = vmax.f32 %v976_v24, 0.0  ;;  %996 = vrot.lane.b32.xlu1 %v2682_v22, %s2078_s8 }
 0x244   : > { %v2762_v36 = vmax.f32 %v978_v34, 0.0 }
 0x245   : > { %998 = vrot.lane.b32.xlu0 %v2688_v27, %s2078_s8 }
 0x247   : > { %1050 = vrot.lane.b32.xlu1 %v2676_v12, %s2079_s11 }
 0x249   : > { %1052 = vrot.lane.b32.xlu0 %v2678_v16, %s2079_s11 }
 0x24b   : > { %1058 = vrot.lane.b32.xlu1 %v2682_v22, %s2079_s11 }
 0x24d   : > { %1060 = vrot.lane.b32.xlu0 %v2688_v27, %s2079_s11 }
 0x24f   : > { %1112 = vrot.lane.b32.xlu1 %v2676_v12, %s2080_s20 }
 0x251   : > { %1114 = vrot.lane.b32.xlu0 %v2678_v16, %s2080_s20 }
 0x253   : > { %1120 = vrot.lane.b32.xlu1 %v2682_v22, %s2080_s20 }
 0x255   : > { %1122 = vrot.lane.b32.xlu0 %v2688_v27, %s2080_s20 }
 0x257   : > { %1174 = vrot.lane.b32.xlu1 %v2676_v12, %s2081_s7 }
 0x259   : > { %1176 = vrot.lane.b32.xlu0 %v2678_v16, %s2081_s7 }
 0x25b   : > { %1182 = vrot.lane.b32.xlu1 %v2682_v22, %s2081_s7 }
 0x25d   : > { %1184 = vrot.lane.b32.xlu0 %v2688_v27, %s2081_s7 }
 0x25f   : > { %1244 = vrot.lane.b32.xlu1 %v2676_v12, %s2082_s18 }
 0x261   : > { %1246 = vrot.lane.b32.xlu0 %v2678_v16, %s2082_s18 }
 0x263   : > { %1252 = vrot.lane.b32.xlu1 %v2682_v22, %s2082_s18 }
 0x265   : > { %1254 = vrot.lane.b32.xlu0 %v2688_v27, %s2082_s18 }
 0x267   : > { %1306 = vrot.lane.b32.xlu1 %v2676_v12, %s2083_s30 }
 0x269   : > { %1308 = vrot.lane.b32.xlu0 %v2678_v16, %s2083_s30 }
 0x26b   : > { %1314 = vrot.lane.b32.xlu1 %v2682_v22, %s2083_s30 }
 0x26d   : > { %1316 = vrot.lane.b32.xlu0 %v2688_v27, %s2083_s30 }
 0x26f   : > { %1368 = vrot.lane.b32.xlu1 %v2676_v12, %s2084_s28 }
 0x271   : > { %1370 = vrot.lane.b32.xlu0 %v2678_v16, %s2084_s28 }
 0x273   : > { %1376 = vrot.lane.b32.xlu1 %v2682_v22, %s2084_s28 }
 0x275   : > { %1378 = vrot.lane.b32.xlu0 %v2688_v27, %s2084_s28 }
 0x277   : > { %1430 = vrot.lane.b32.xlu1 %v2676_v12, %s2085_s13 }
 0x279   : > { %1432 = vrot.lane.b32.xlu0 %v2678_v16, %s2085_s13 }
 0x27b   : > { %1438 = vrot.lane.b32.xlu1 %v2682_v22, %s2085_s13 }
 0x27d   : > { %1440 = vrot.lane.b32.xlu0 %v2688_v27, %s2085_s13 }
 0x27f   : > { %992 = vrot.lane.b32.xlu1 %v2750_v31, %s2078_s8 }
 0x281   : > { %994 = vrot.lane.b32.xlu0 %v2754_v33, %s2078_s8 }
 0x283   : > { %1000 = vrot.lane.b32.xlu1 %v2758_v35, %s2078_s8 }
 0x285   : > { %1002 = vrot.lane.b32.xlu0 %v2762_v36, %s2078_s8 }
 0x287   : > { %1054 = vrot.lane.b32.xlu1 %v2750_v31, %s2079_s11 }
 0x289   : > { %1056 = vrot.lane.b32.xlu0 %v2754_v33, %s2079_s11 }
 0x28b   : > { %1062 = vrot.lane.b32.xlu1 %v2758_v35, %s2079_s11 }
 0x28d   : > { %1064 = vrot.lane.b32.xlu0 %v2762_v36, %s2079_s11 }
 0x28f   : > { %1116 = vrot.lane.b32.xlu1 %v2750_v31, %s2080_s20 }
 0x291   : > { %1118 = vrot.lane.b32.xlu0 %v2754_v33, %s2080_s20 }
 0x293   : > { %1124 = vrot.lane.b32.xlu1 %v2758_v35, %s2080_s20 }
 0x295   : > { %1126 = vrot.lane.b32.xlu0 %v2762_v36, %s2080_s20 }
 0x297   : > { %1178 = vrot.lane.b32.xlu1 %v2750_v31, %s2081_s7 }
 0x299   : > { %1180 = vrot.lane.b32.xlu0 %v2754_v33, %s2081_s7 }
 0x29b   : > { %1186 = vrot.lane.b32.xlu1 %v2758_v35, %s2081_s7 }
 0x29d   : > { %1188 = vrot.lane.b32.xlu0 %v2762_v36, %s2081_s7 }
 0x29f   : > { %1248 = vrot.lane.b32.xlu1 %v2750_v31, %s2082_s18 }
 0x2a1   : > { %1250 = vrot.lane.b32.xlu0 %v2754_v33, %s2082_s18 }
 0x2a3   : > { %1256 = vrot.lane.b32.xlu1 %v2758_v35, %s2082_s18 }
 0x2a5   : > { %1258 = vrot.lane.b32.xlu0 %v2762_v36, %s2082_s18 }
 0x2a7   : > { %1310 = vrot.lane.b32.xlu1 %v2750_v31, %s2083_s30 }
 0x2a9   : > { %1312 = vrot.lane.b32.xlu0 %v2754_v33, %s2083_s30 }
 0x2ab   : > { %1318 = vrot.lane.b32.xlu1 %v2758_v35, %s2083_s30 }
 0x2ad   : > { %1320 = vrot.lane.b32.xlu0 %v2762_v36, %s2083_s30 }
 0x2af   : > { %1372 = vrot.lane.b32.xlu1 %v2750_v31, %s2084_s28 }
 0x2b1   : > { %1374 = vrot.lane.b32.xlu0 %v2754_v33, %s2084_s28  ;;  %v2812_v37 = vpop.permute.xlu1 %988 }
 0x2b3   : > { %v2814_v38 = vpop.permute.xlu0 %990  ;;  %1380 = vrot.lane.b32.xlu1 %v2758_v35, %s2084_s28 }
 0x2b5   : > { %1382 = vrot.lane.b32.xlu0 %v2762_v36, %s2084_s28  ;;  %v997_v40 = vpop.permute.xlu1 %996 }
 0x2b7   : > { %v999_v41 = vpop.permute.xlu0 %998  ;;  %1434 = vrot.lane.b32.xlu1 %v2750_v31, %s2085_s13 }
 0x2b9   : > { %1436 = vrot.lane.b32.xlu0 %v2754_v33, %s2085_s13  ;;  %v2826_v42 = vpop.permute.xlu1 %1050 }
 0x2bb   : > { %v2828_v43 = vpop.permute.xlu0 %1052  ;;  %1442 = vrot.lane.b32.xlu1 %v2758_v35, %s2085_s13 }
 0x2bd   : > { %1444 = vrot.lane.b32.xlu0 %v2762_v36, %s2085_s13  ;;  %v2837_v45 = vpop.permute.xlu1 %1058  ;;  %s298_s13 = scalar_lea.vmem [#allocation9], %s1779_s29 }
 0x2be   : > { %s1678_s14 = sshll.u32 %s298_s13, 4  ;;  %s3156_s14 = int_to_ptr.vmem [resolvable:$true] %s1678_s14 }
 0x2bf   : > { %v2842_v47 = vpop.permute.xlu0 %1060  ;;  %1534 = vperm.xlu1 %1897, %v1530_v44   ;;  %s1998_s12 = scalar_lea.vmem %s3156_s14, 1024 }
 0x2c0   : > { %p1999_p3 = scmp.ne.s32.totalorder %s3156_s14, %s1998_s12 }
 0x2c1   : > { %1539 = vperm.xlu0 %1896, %v1531_v46   ;;  %v2844_v48 = vpop.permute.xlu1 %1112  ;;  %v1794_v46 = vld [vmem:[%s3207_s1 + $0x4] sm:$0xf] }
 0x2c2   : > { %p2000_p10 = pnand %p1999_p3, %p3238_p9 }
 0x2c3   : > { %v2846_v49 = vpop.permute.xlu0 %1114 }
 0x2c4   : > { %p2001_p1 = pneg %p2000_p10 }
 0x2c5   : > { %v2848_v50 = vpop.permute.xlu1 %1120 }
 0x2c7   : > { %v2850_v51 = vpop.permute.xlu0 %1122 }
 0x2c9   : > { %v2852_v52 = vpop.permute.xlu1 %1174 }
 0x2cb   : > { %v2854_v53 = vpop.permute.xlu0 %1176 }
 0x2cd   : > { %v2856_v54 = vpop.permute.xlu1 %1182 }
 0x2cf   : > { %v2858_v0 = vpop.permute.xlu0 %1184 }
 0x2d1   : > { %v2860_v2 = vpop.permute.xlu1 %1244 }
 0x2d3   : > { %v2862_v6 = vpop.permute.xlu0 %1246 }
 0x2d5   : > { %v2864_v7 = vpop.permute.xlu1 %1252 }
 0x2d7   : > { %v2866_v55 = vpop.permute.xlu0 %1254 }
 0x2d9   : > { %v2868_v56 = vpop.permute.xlu1 %1306 }
 0x2db   : > { %v2870_v57 = vpop.permute.xlu0 %1308 }
 0x2dd   : > { %v2872_v1 = vpop.permute.xlu1 %1314 }
 0x2df   : > { %v2874_v3 = vpop.permute.xlu0 %1316 }
 0x2e1   : > { %v2876_v58 = vpop.permute.xlu1 %1368 }
 0x2e3   : > { %v2878_v59 = vpop.permute.xlu0 %1370 }
 0x2e5   : > { %v2880_v4 = vpop.permute.xlu1 %1376 }
 0x2e7   : > { %v2882_v5 = vpop.permute.xlu0 %1378 }
 0x2e9   : > { %v2884_v60 = vpop.permute.xlu1 %1430 }
 0x2eb   : > { %v2886_v61 = vpop.permute.xlu0 %1432 }
 0x2ec   : > { %3234 = vst [vmem:[#allocation14_spill] sm:$0xff] %v2886_v61 }
 0x2ed   : > { %v2888_v62 = vpop.permute.xlu1 %1438 }
 0x2ef   : > { %v2893_v8 = vpop.permute.xlu0 %1440 }
 0x2f1   : > { %v993_v14 = vpop.permute.xlu1 %992 }
 0x2f2   : > { %v1006_v15 = vsel %vm328_vm1, %v993_v14, %v997_v40  ;;  %v1008_v17 = vsel %vm328_vm1, %v2812_v37, %v993_v14 }
 0x2f3   : > { %v995_v18 = vpop.permute.xlu0 %994  ;;  %v1035_v30 = vmul.f32 %v1021_v9, %v1008_v17  ;;  %v1036_v32 = vmul.f32 %v1025_v13, %v1006_v15  ;;  %v1087_v15 = vrot.slane %v1794_v46, %v2463_v20 }
 0x2f4   : > { %v1007_v19 = vsel %vm328_vm1, %v995_v18, %v999_v41  ;;  %v1009_v24 = vsel %vm328_vm1, %v2814_v38, %v995_v18 }
 0x2f5   : > { %v1039_v34 = vmul.f32 %v1021_v9, %v1009_v24  ;;  %v1040_v39 = vmul.f32 %v1025_v13, %v1007_v19  ;;  %v1001_v44 = vpop.permute.xlu1 %1000  ;;  %v1083_v13 = vrot.slane %v1794_v46, %v2448_v11 }
 0x2f6   : > { %v1004_v14 = vsel %vm328_vm1, %v997_v40, %v1001_v44  ;;  %v1010_v18 = vsel %vm328_vm1, %v1001_v44, %v2812_v37 }
 0x2f7   : > { %v1044_v28 = vpack.c.bf16 %v1040_v39, %v1036_v32  ;;  %v1003_v26 = vpop.permute.xlu0 %1002  ;;  %v1043_v61 = vpack.c.bf16 %v1039_v34, %v1035_v30  ;;  %v1034_v17 = vmul.f32 %v1017_v25, %v1010_v18  ;;  %v1037_v40 = vmul.f32 %v1029_v29, %v1004_v14 }
 0x2f8   : > { %v1005_v63 = vsel %vm328_vm1, %v999_v41, %v1003_v26  ;;  %v1011_v9 = vsel %vm328_vm1, %v1003_v26, %v2814_v38  ;;  %v1079_v34 = vrot.slane %v1794_v46, %v2465_v21 }
 0x2f9   : > { %v1038_v19 = vmul.f32 %v1017_v25, %v1011_v9  ;;  %v1041_v24 = vmul.f32 %v1029_v29, %v1005_v63  ;;  %1554 = vmatprep.subr.bf16.mxu0 %v1043_v61  ;;  %v1055_v37 = vpop.permute.xlu1 %1054  ;;  %v1091_v29 = vrot.slane %v1794_v46, %v2473_v23  ;;  %v1795_v9 = vld [vmem:[%s3207_s1 + $0x8] sm:$0xf] }
 0x2fa   : > { %v1068_v30 = vsel %vm391_vm2, %v1055_v37, %v2837_v45  ;;  %v1070_v41 = vsel %vm391_vm2, %v2826_v42, %v1055_v37  ;;  %v1145_v37 = vrot.slane %v1795_v9, %v2448_v11 }
 0x2fb   : > { %v1042_v32 = vpack.c.bf16 %v1038_v19, %v1034_v17  ;;  %v1057_v26 = vpop.permute.xlu0 %1056  ;;  %v1045_v38 = vpack.c.bf16 %v1041_v24, %v1037_v40  ;;  %v1097_v39 = vmul.f32 %v1083_v13, %v1070_v41  ;;  %v1098_v44 = vmul.f32 %v1087_v15, %v1068_v30 }
 0x2fc   : > { %v1069_v25 = vsel %vm391_vm2, %v1057_v26, %v2842_v47  ;;  %v1071_v61 = vsel %vm391_vm2, %v2828_v43, %v1057_v26 }
 0x2fd   : > { %v1101_v14 = vmul.f32 %v1083_v13, %v1071_v61  ;;  %v1102_v18 = vmul.f32 %v1087_v15, %v1069_v25  ;;  %1555 = vmatpush1.bf16.msra.mxu0 %v1042_v32  ;;  %1597 = vmatprep.subr.bf16.mxu1 %v1045_v38  ;;  %v1063_v63 = vpop.permute.xlu1 %1062  ;;  %v1141_v25 = vrot.slane %v1795_v9, %v2465_v21 }
 0x2fe   : > { %v1066_v17 = vsel %vm391_vm2, %v2837_v45, %v1063_v63  ;;  %v1072_v40 = vsel %vm391_vm2, %v1063_v63, %v2826_v42  ;;  %1598 = vmatpush1.bf16.msra.mxu1 %v1044_v28  ;;  %v1149_v45 = vrot.slane %v1795_v9, %v2463_v20 }
 0x2ff   : > { %v1106_v46 = vpack.c.bf16 %v1102_v18, %v1098_v44  ;;  %v1065_v19 = vpop.permute.xlu0 %1064  ;;  %v1105_v13 = vpack.c.bf16 %v1101_v14, %v1097_v39  ;;  %v1096_v30 = vmul.f32 %v1079_v34, %v1072_v40  ;;  %v1099_v41 = vmul.f32 %v1091_v29, %v1066_v17  ;;  %v1796_v40 = vld [vmem:[%s3207_s1 + $0xc] sm:$0xf] }
 0x300   : > { %v1067_v15 = vsel %vm391_vm2, %v2842_v47, %v1065_v19  ;;  %v1073_v24 = vsel %vm391_vm2, %v1065_v19, %v2828_v43  ;;  %v1153_v44 = vrot.slane %v1795_v9, %v2473_v23 }
 0x301   : > { %v1100_v32 = vmul.f32 %v1079_v34, %v1073_v24  ;;  %v1103_v42 = vmul.f32 %v1091_v29, %v1067_v15  ;;  %1556 = vmatprep.subr.bf16.mxu0 %v1105_v13  ;;  %v1117_v28 = vpop.permute.xlu1 %1116 }
 0x302   : > { %v1130_v26 = vsel %vm455_vm3, %v1117_v28, %v2848_v50  ;;  %v1132_v47 = vsel %vm455_vm3, %v2844_v48, %v1117_v28 }
 0x303   : > { %v1104_v38 = vpack.c.bf16 %v1100_v32, %v1096_v30  ;;  %v1119_v43 = vpop.permute.xlu0 %1118  ;;  %v1107_v39 = vpack.c.bf16 %v1103_v42, %v1099_v41  ;;  %v1159_v61 = vmul.f32 %v1145_v37, %v1132_v47  ;;  %v1160_v14 = vmul.f32 %v1149_v45, %v1130_v26 }
 0x304   : > { %v1131_v34 = vsel %vm455_vm3, %v1119_v43, %v2850_v51  ;;  %v1133_v29 = vsel %vm455_vm3, %v2846_v49, %v1119_v43  ;;  %v1207_v30 = vrot.slane %v1796_v40, %v2448_v11 }
 0x305   : > { %v1163_v18 = vmul.f32 %v1145_v37, %v1133_v29  ;;  %v1164_v63 = vmul.f32 %v1149_v45, %v1131_v34  ;;  %1557 = vmatpush1.bf16.msra.mxu0 %v1104_v38  ;;  %1599 = vmatprep.subr.bf16.mxu1 %v1107_v39  ;;  %v1125_v17 = vpop.permute.xlu1 %1124  ;;  %v1203_v38 = vrot.slane %v1796_v40, %v2465_v21 }
 0x306   : > { %v1128_v19 = vsel %vm455_vm3, %v2848_v50, %v1125_v17  ;;  %v1134_v13 = vsel %vm455_vm3, %v1125_v17, %v2844_v48  ;;  %1600 = vmatpush1.bf16.msra.mxu1 %v1106_v46  ;;  %v1211_v50 = vrot.slane %v1796_v40, %v2463_v20 }
 0x307   : > { %v1168_v9 = vpack.c.bf16 %v1164_v63, %v1160_v14  ;;  %v1127_v15 = vpop.permute.xlu0 %1126  ;;  %v1167_v24 = vpack.c.bf16 %v1163_v18, %v1159_v61  ;;  %v1158_v41 = vmul.f32 %v1141_v25, %v1134_v13  ;;  %v1161_v32 = vmul.f32 %v1153_v44, %v1128_v19  ;;  %v1797_v18 = vld [vmem:[%s3207_s1 + $0x14] sm:$0xf] }
 0x308   : > { %v1129_v37 = vsel %vm455_vm3, %v2850_v51, %v1127_v15  ;;  %v1135_v45 = vsel %vm455_vm3, %v1127_v15, %v2846_v49  ;;  %v1215_v61 = vrot.slane %v1796_v40, %v2473_v23 }
 0x309   : > { %v1162_v42 = vmul.f32 %v1141_v25, %v1135_v45  ;;  %v1165_v48 = vmul.f32 %v1153_v44, %v1129_v37  ;;  %1558 = vmatprep.subr.bf16.mxu0 %v1167_v24  ;;  %v1179_v46 = vpop.permute.xlu1 %1178  ;;  %v1277_v37 = vrot.slane %v1797_v18, %v2448_v11 }
 0x30a   : > { %v1192_v28 = vsel %vm519_vm4, %v1179_v46, %v2856_v54  ;;  %v1194_v51 = vsel %vm519_vm4, %v2852_v52, %v1179_v46 }
 0x30b   : > { %v1166_v26 = vpack.c.bf16 %v1162_v42, %v1158_v41  ;;  %v1181_v49 = vpop.permute.xlu0 %1180  ;;  %v1169_v47 = vpack.c.bf16 %v1165_v48, %v1161_v32  ;;  %v1221_v43 = vmul.f32 %v1207_v30, %v1194_v51  ;;  %v1222_v34 = vmul.f32 %v1211_v50, %v1192_v28 }
 0x30c   : > { %v1193_v39 = vsel %vm519_vm4, %v1181_v49, %v2858_v0  ;;  %v1195_v25 = vsel %vm519_vm4, %v2854_v53, %v1181_v49  ;;  %v1237_v41 = vpack.c.bf16 %v2754_v33, %v2750_v31  ;;  %v1273_v32 = vrot.slane %v1797_v18, %v2465_v21  ;;  %v1798_v33 = vld [vmem:[%s3207_s1 + $0x18] sm:$0xf] }
 0x30d   : > { %v1225_v29 = vmul.f32 %v1207_v30, %v1195_v25  ;;  %v1226_v44 = vmul.f32 %v1211_v50, %v1193_v39  ;;  %1559 = vmatpush1.bf16.msra.mxu0 %v1166_v26  ;;  %1601 = vmatprep.subr.bf16.mxu1 %v1169_v47  ;;  %v1187_v14 = vpop.permute.xlu1 %1186  ;;  %v1239_v48 = vpack.c.bf16 %v2762_v36, %v2758_v35 }
 0x30e   : > { %v1190_v63 = vsel %vm519_vm4, %v2856_v54, %v1187_v14  ;;  %v1196_v17 = vsel %vm519_vm4, %v1187_v14, %v2852_v52  ;;  %1602 = vmatpush1.bf16.msra.mxu1 %v1168_v9  ;;  %v1281_v51 = vrot.slane %v1797_v18, %v2463_v20  ;;  %v1285_v31 = vrot.slane %v1797_v18, %v2473_v23 }
 0x30f   : > { %v1230_v40 = vpack.c.bf16 %v1226_v44, %v1222_v34  ;;  %v1189_v19 = vpop.permute.xlu0 %1188  ;;  %v1229_v13 = vpack.c.bf16 %v1225_v29, %v1221_v43  ;;  %v1220_v45 = vmul.f32 %v1203_v38, %v1196_v17  ;;  %v1223_v54 = vmul.f32 %v1215_v61, %v1190_v63 }
 0x310   : > { %v1191_v15 = vsel %vm519_vm4, %v2858_v0, %v1189_v19  ;;  %v1197_v24 = vsel %vm519_vm4, %v1189_v19, %v2854_v53  ;;  %v1335_v25 = vrot.slane %v1798_v33, %v2465_v21  ;;  %v1339_v44 = vrot.slane %v1798_v33, %v2448_v11 }
 0x311   : > { %v1224_v30 = vmul.f32 %v1203_v38, %v1197_v24  ;;  %v1227_v50 = vmul.f32 %v1215_v61, %v1191_v15  ;;  %1560 = vmatprep.subr.bf16.mxu0 %v1229_v13  ;;  %v1249_v52 = vpop.permute.xlu1 %1248 }
 0x312   : > { %v1262_v9 = vsel %vm591_vm5, %v1249_v52, %v2864_v7  ;;  %v1264_v35 = vsel %vm591_vm5, %v2860_v2, %v1249_v52 }
 0x313   : > { %v1228_v0 = vpack.c.bf16 %v1224_v30, %v1220_v45  ;;  %v1251_v42 = vpop.permute.xlu0 %1250  ;;  %v1231_v53 = vpack.c.bf16 %v1227_v50, %v1223_v54  ;;  %v1291_v36 = vmul.f32 %v1277_v37, %v1262_v9  ;;  %v1290_v34 = vmul.f32 %v1273_v32, %v1264_v35  ;;  %v1799_v9 = vld [vmem:[%s3207_s1 + $0x1c] sm:$0xf] }
 0x314   : > { %v1263_v46 = vsel %vm591_vm5, %v1251_v42, %v2866_v55  ;;  %v1265_v28 = vsel %vm591_vm5, %v2862_v6, %v1251_v42  ;;  %v1347_v30 = vrot.slane %v1798_v33, %v2473_v23 }
 0x315   : > { %v1295_v26 = vmul.f32 %v1277_v37, %v1263_v46  ;;  %1561 = vmatpush1.bf16.msra.mxu0 %v1228_v0  ;;  %1603 = vmatprep.subr.bf16.mxu1 %v1231_v53  ;;  %v1257_v49 = vpop.permute.xlu1 %1256  ;;  %v1294_v43 = vmul.f32 %v1273_v32, %v1265_v28  ;;  %v1397_v28 = vrot.slane %v1799_v9, %v2465_v21 }
 0x316   : > { %v1260_v47 = vsel %vm591_vm5, %v2864_v7, %v1257_v49  ;;  %v1266_v38 = vsel %vm591_vm5, %v1257_v49, %v2860_v2  ;;  %1562 = vmatprep.subr.bf16.mxu0 %v1237_v41  ;;  %1604 = vmatpush1.bf16.msra.mxu1 %v1230_v40  ;;  %v3235_v40 = vpack.c.bf16 %v2678_v16, %v2676_v12 }
 0x317   : > { %v1259_v39 = vpop.permute.xlu0 %1258  ;;  %1605 = vmatprep.subr.bf16.mxu1 %v1239_v48  ;;  %v1299_v61 = vpack.c.bf16 %v1295_v26, %v1291_v36  ;;  %v1292_v2 = vmul.f32 %v1281_v51, %v1260_v47  ;;  %v1293_v14 = vmul.f32 %v1285_v31, %v1266_v38  ;;  %v1298_v13 = vpack.c.bf16 %v1294_v43, %v1290_v34 }
 0x318   : > { %v1261_v29 = vsel %vm591_vm5, %v2866_v55, %v1259_v39  ;;  %v1267_v7 = vsel %vm591_vm5, %v1259_v39, %v2862_v6  ;;  %v3236_v6 = vpack.c.bf16 %v2688_v27, %v2682_v22  ;;  %v1343_v12 = vrot.slane %v1798_v33, %v2463_v20 }
 0x319   : > { %v1296_v18 = vmul.f32 %v1281_v51, %v1261_v29  ;;  %v1297_v63 = vmul.f32 %v1285_v31, %v1267_v7  ;;  %v1311_v17 = vpop.permute.xlu1 %1310  ;;  %1563 = vmatpush1.bf16.msra.mxu0 %v3235_v40  ;;  %v1405_v43 = vrot.slane %v1799_v9, %v2463_v20  ;;  %v1409_v39 = vrot.slane %v1799_v9, %v2473_v23 }
 0x31a   : > { %v1324_v19 = vsel %vm655_vm6, %v1311_v17, %v2872_v1  ;;  %v1326_v55 = vsel %vm655_vm6, %v2868_v56, %v1311_v17  ;;  %1564 = vmatprep.subr.bf16.mxu0 %v1299_v61  ;;  %1606 = vmatpush1.bf16.msra.mxu1 %v3236_v6 }
 0x31b   : > { %v1300_v15 = vpack.c.bf16 %v1296_v18, %v1292_v2  ;;  %v1313_v24 = vpop.permute.xlu0 %1312  ;;  %v1301_v37 = vpack.c.bf16 %v1297_v63, %v1293_v14  ;;  %v1352_v16 = vmul.f32 %v1335_v25, %v1326_v55  ;;  %v1353_v50 = vmul.f32 %v1339_v44, %v1324_v19 }
 0x31c   : > { %v1325_v45 = vsel %vm655_vm6, %v1313_v24, %v2874_v3  ;;  %v1327_v54 = vsel %vm655_vm6, %v2870_v57, %v1313_v24 }
 0x31d   : > { %v1356_v22 = vmul.f32 %v1335_v25, %v1327_v54  ;;  %v1357_v27 = vmul.f32 %v1339_v44, %v1325_v45  ;;  %1607 = vmatprep.subr.bf16.mxu1 %v1301_v37  ;;  %v1319_v52 = vpop.permute.xlu1 %1318  ;;  %1565 = vmatpush1.bf16.msra.mxu0 %v1298_v13  ;;  %v1800_v44 = vld [vmem:[%s3207_s1 + $0x20] sm:$0xf] }
 0x31e   : > { %v1322_v41 = vsel %vm655_vm6, %v2872_v1, %v1319_v52  ;;  %v1328_v0 = vsel %vm655_vm6, %v1319_v52, %v2868_v56  ;;  %1608 = vmatpush1.bf16.msra.mxu1 %v1300_v15  ;;  %v1401_v1 = vrot.slane %v1799_v9, %v2448_v11  ;;  %v1459_v55 = vrot.slane %v1800_v44, %v2465_v21 }
 0x31f   : > { %v1360_v32 = vpack.c.bf16 %v1356_v22, %v1352_v16  ;;  %v1321_v42 = vpop.permute.xlu0 %1320  ;;  %v1361_v53 = vpack.c.bf16 %v1357_v27, %v1353_v50  ;;  %v1354_v51 = vmul.f32 %v1343_v12, %v1322_v41  ;;  %v1355_v31 = vmul.f32 %v1347_v30, %v1328_v0  ;;  %v3237_v16 = vld [vmem:[#allocation14_spill] sm:$0xff] }
 0x320   : > { %v1323_v48 = vsel %vm655_vm6, %v2874_v3, %v1321_v42  ;;  %v1329_v46 = vsel %vm655_vm6, %v1321_v42, %v2870_v57  ;;  %v1467_v54 = vrot.slane %v1800_v44, %v2463_v20 }
 0x321   : > { %v1358_v33 = vmul.f32 %v1343_v12, %v1323_v48  ;;  %v1359_v56 = vmul.f32 %v1347_v30, %v1329_v46  ;;  %v1373_v35 = vpop.permute.xlu1 %1372  ;;  %1566 = vmatprep.subr.bf16.mxu0 %v1361_v53  ;;  %v1471_v30 = vrot.slane %v1800_v44, %v2473_v23 }
 0x322   : > { %v1386_v36 = vsel %vm719_vm7, %v1373_v35, %v2880_v4  ;;  %v1388_v3 = vsel %vm719_vm7, %v2876_v58, %v1373_v35  ;;  %1567 = vmatpush1.bf16.msra.mxu0 %v1360_v32 }
 0x323   : > { %v1362_v57 = vpack.c.bf16 %v1358_v33, %v1354_v51  ;;  %v1375_v26 = vpop.permute.xlu0 %1374  ;;  %v1363_v49 = vpack.c.bf16 %v1359_v56, %v1355_v31  ;;  %v1414_v25 = vmul.f32 %v1397_v28, %v1388_v3  ;;  %v1415_v61 = vmul.f32 %v1401_v1, %v1386_v36  ;;  %v1904_v3 = vld [vmem:[%s2296_s26] sm:$0xff] }
 0x324   : > { %v1387_v47 = vsel %vm719_vm7, %v1375_v26, %v2882_v5  ;;  %v1389_v38 = vsel %vm719_vm7, %v2878_v59, %v1375_v26 }
 0x325   : > { %v1418_v34 = vmul.f32 %v1397_v28, %v1389_v38  ;;  %v1419_v29 = vmul.f32 %v1401_v1, %v1387_v47  ;;  %1609 = vmatprep.subr.bf16.mxu1 %v1363_v49  ;;  %v1381_v7 = vpop.permute.xlu1 %1380  ;;  %v1903_v1 = vld [vmem:[#allocation8] ss:$8 sps:$4 sm:$0xff]   ;;  %v1905_v47 = vld [vmem:[%s2296_s26 + $0x8] sm:$0xff] }
 0x326   : > { %v1384_v2 = vsel %vm719_vm7, %v2880_v4, %v1381_v7  ;;  %v1390_v14 = vsel %vm719_vm7, %v1381_v7, %v2876_v58  ;;  %1610 = vmatpush1.bf16.msra.mxu1 %v1362_v57  ;;  %v1463_v4 = vrot.slane %v1800_v44, %v2448_v11 }
 0x327   : > { %v1422_v18 = vpack.c.bf16 %v1418_v34, %v1414_v25  ;;  %v1383_v63 = vpop.permute.xlu0 %1382  ;;  %v1423_v17 = vpack.c.bf16 %v1419_v29, %v1415_v61  ;;  %v1416_v6 = vmul.f32 %v1405_v43, %v1384_v2  ;;  %v1417_v13 = vmul.f32 %v1409_v39, %v1390_v14  ;;  %v1906_v61 = vld [vmem:[%s2296_s26 + $0x20] sm:$0xff]  ;;  %v1907_v2 = vld [vmem:[%s2296_s26 + $0x28] sm:$0xff] }
 0x328   : > { %v1385_v40 = vsel %vm719_vm7, %v2882_v5, %v1383_v63  ;;  %v1391_v19 = vsel %vm719_vm7, %v1383_v63, %v2878_v59 }
 0x329   : > { %v1420_v15 = vmul.f32 %v1405_v43, %v1385_v40  ;;  %v1421_v58 = vmul.f32 %v1409_v39, %v1391_v19  ;;  %v1435_v24 = vpop.permute.xlu1 %1434  ;;  %1568 = vmatprep.subr.bf16.mxu0 %v1423_v17  ;;  %v1908_v40 = vld [vmem:[%s2296_s26 + $0x10] sm:$0xff] }
 0x32a   : > { %v1448_v37 = vsel %vm783_vm8, %v1435_v24, %v2888_v62  ;;  %v1450_v5 = vsel %vm783_vm8, %v2884_v60, %v1435_v24  ;;  %1569 = vmatpush1.bf16.msra.mxu0 %v1422_v18 }
 0x32b   : > { %v1424_v59 = vpack.c.bf16 %v1420_v15, %v1416_v6  ;;  %v1437_v12 = vpop.permute.xlu0 %1436  ;;  %v1425_v21 = vpack.c.bf16 %v1421_v58, %v1417_v13  ;;  %v1476_v50 = vmul.f32 %v1459_v55, %v1450_v5  ;;  %v1477_v22 = vmul.f32 %v1463_v4, %v1448_v37  ;;  %v1909_v13 = vld [vmem:[%s2296_s26 + $0x18] sm:$0xff]  ;;  %v1910_v37 = vld [vmem:[%s2296_s26 + $0x30] sm:$0xff] }
 0x32c   : > { %v1449_v11 = vsel %vm783_vm8, %v1437_v12, %v2893_v8  ;;  %v1451_v45 = vsel %vm783_vm8, %v3237_v16, %v1437_v12  ;;  %v1911_v12 = vld [vmem:[%s2296_s26 + $0x38] sm:$0xff]  ;;  %s2087_s26 = smov [#allocation9]  }
 0x32d   : > { %v1480_v27 = vmul.f32 %v1459_v55, %v1451_v45  ;;  %v1481_v52 = vmul.f32 %v1463_v4, %v1449_v11  ;;  %1611 = vmatprep.subr.bf16.mxu1 %v1425_v21  ;;  %v1443_v9 = vpop.permute.xlu1 %1442  ;;  %s2002_s8 = sshll.u32 %s2087_s26, 4  ;;  %s2003_s8 = int_to_ptr.vmem [resolvable:$false] %s2002_s8 }
 0x32e   : > { %v1446_v41 = vsel %vm783_vm8, %v2888_v62, %v1443_v9  ;;  %v1452_v0 = vsel %vm783_vm8, %v1443_v9, %v2884_v60  ;;  %1612 = vmatpush1.bf16.msra.mxu1 %v1424_v59  ;;  %s2004_s11 = scalar_lea.vmem %s2003_s8, 2048  ;;  %p2005_p0 = scmp.lt.s32.totalorder %s3156_s14, %s2003_s8 }
 0x32f   : > { %v1484_v32 = vpack.c.bf16 %v1480_v27, %v1476_v50  ;;  %v1445_v42 = vpop.permute.xlu0 %1444  ;;  %v1485_v20 = vpack.c.bf16 %v1481_v52, %v1477_v22  ;;  %v1478_v48 = vmul.f32 %v1467_v54, %v1446_v41  ;;  %v1479_v46 = vmul.f32 %v1471_v30, %v1452_v0  ;;  %p2006_p7 = scmp.lt.s32.totalorder %s2004_s11, %s1998_s12 }
 0x330   : > { %v1447_v23 = vsel %vm783_vm8, %v2893_v8, %v1445_v42  ;;  %v1453_v53 = vsel %vm783_vm8, %v1445_v42, %v3237_v16 }
 0x331   : > { %v1482_v28 = vmul.f32 %v1467_v54, %v1447_v23  ;;  %v1483_v62 = vmul.f32 %v1471_v30, %v1453_v53  ;;  %1570 = vmatprep.subr.bf16.mxu0 %v1485_v20  ;;  %p2007_p2 = por %p2006_p7, %p2005_p0 }
 0x332   : > { %1571 = vmatpush1.bf16.msra.mxu0 %v1484_v32 }
 0x333   : > { %v1486_v60 = vpack.c.bf16 %v1482_v28, %v1478_v48  ;;  %v1487_v51 = vpack.c.bf16 %v1483_v62, %v1479_v46  ;;  %p2008_p5 = pnand %p2007_p2, %p2001_p1 }
 0x335   : > { %1587 = vmatmul.mubr.bf16.vlgmr.msra.gmra.mrb[4].mxu0 %v1903_v1  ;;  %1613 = vmatprep.subr.bf16.mxu1 %v1487_v51 }
 0x336   : > { %1614 = vmatpush1.bf16.msra.mxu1 %v1486_v60 }
 0x339   : > { %1630 = vmatmul.mubr.bf16.vlgmr.msra.gmra.mrb[4].mxu1 %v1903_v1 }
 0x33e   : > { %v1535_v8 = vpop.permute.xlu1 %1534 }
 0x340   : > { %v1540_v56 = vpop.permute.xlu0 %1539 }
 0x408   : > { %v1588_v31 = vpop.f32.mrb[4].mxu0 }
 0x409   : > { %v1589_v10 = vadd.f32 %v1588_v31, %v1535_v8  ;;  %v1590_v33 = vpop.f32.mrb[5].mxu0 }
 0x40a   : > { %v1591_v35 = vadd.f32 %v1590_v33, %v1535_v8  ;;  %v1592_v36 = vpop.f32.mrb[6].mxu0 }
 0x40b   : > { %v1640_v57 = vadd.f32 %v1904_v3, %v1589_v10  ;;  %v1593_v26 = vadd.f32 %v1592_v36, %v1540_v56  ;;  %v1594_v49 = vpop.f32.mrb[7].mxu0 }
 0x40c   : > { %v1641_v38 = vadd.f32 %v1905_v47, %v1591_v35  ;;  %v1595_v43 = vadd.f32 %v1594_v49, %v1540_v56  ;;  %v1631_v39 = vpop.f32.mrb[4].mxu1 }
 0x40d   : > { %v1648_v25 = vmax.f32 %v1640_v57, 0.0  ;;  %v1644_v34 = vadd.f32 %v1906_v61, %v1593_v26  ;;  %v1632_v29 = vadd.f32 %v1631_v39, %v1535_v8  ;;  %v1633_v7 = vpop.f32.mrb[5].mxu1 }
 0x40e   : > { %v1649_v44 = vmax.f32 %v1641_v38, 0.0  ;;  %v1645_v14 = vadd.f32 %v1907_v2, %v1595_v43  ;;  %v1634_v18 = vadd.f32 %v1633_v7, %v1535_v8  ;;  %v1635_v63 = vpop.f32.mrb[6].mxu1 }
 0x40f   : > { %1656 = vst [vmem:[%s298_s13] sm:$0xff] %v1648_v25  ;;  %v1652_v17 = vmax.f32 %v1644_v34, 0.0  ;;  %v1642_v19 = vadd.f32 %v1908_v40, %v1632_v29  ;;  %v1636_v55 = vadd.f32 %v1635_v63, %v1540_v56  ;;  %v1637_v4 = vpop.f32.mrb[7].mxu1 }
 0x410   : > { %1657 = vst [vmem:[%s298_s13 + $0x8] sm:$0xff] %v1649_v44  ;;  %v1653_v6 = vmax.f32 %v1645_v14, 0.0  ;;  %v1643_v15 = vadd.f32 %v1909_v13, %v1634_v18  ;;  %v1638_v58 = vadd.f32 %v1637_v4, %v1540_v56 }
 0x411   : > { %1660 = vst [vmem:[%s298_s13 + $0x20] sm:$0xff] %v1652_v17  ;;  %v1650_v24 = vmax.f32 %v1642_v19, 0.0  ;;  %v1646_v5 = vadd.f32 %v1910_v37, %v1636_v55 }
 0x412   : > { %1661 = vst [vmem:[%s298_s13 + $0x28] sm:$0xff] %v1653_v6  ;;  %v1651_v59 = vmax.f32 %v1643_v15, 0.0  ;;  %v1647_v21 = vadd.f32 %v1911_v12, %v1638_v58 }
 0x413   : > { %1658 = vst [vmem:[%s298_s13 + $0x10] sm:$0xff] %v1650_v24  ;;  %v1654_v11 = vmax.f32 %v1646_v5, 0.0 }
 0x414   : > { %1659 = vst [vmem:[%s298_s13 + $0x18] sm:$0xff] %v1651_v59  ;;  %v1655_v16 = vmax.f32 %v1647_v21, 0.0 }
 0x415   : > { %1662 = vst [vmem:[%s298_s13 + $0x30] sm:$0xff] %v1654_v11 }
 0x416   : > { %1663 = vst [vmem:[%s298_s13 + $0x38] sm:$0xff] %v1655_v16 }
 0x417   : > { %2011 = shalt.err (!%p2008_p5)
}
 0x418   : > { %s2012_s20 = scalar_lea.hbm %s3162_s25, 1024  ;;  %s2016_s30 = scalar_lea.hbm %s3212_s6, 2048 }
 0x419   : > { %p2013_p11 = scmp.ne.s32.totalorder %s3162_s25, %s2012_s20  ;;  %p2017_p6 = scmp.lt.u32.totalorder %s3162_s25, %s3212_s6 }
 0x41a   : > { %p2018_p8 = scmp.lt.u32.totalorder %s2016_s30, %s2012_s20  ;;  %p2020_p3 = scmp.lt.u32.totalorder %s2012_s20, %s3162_s25 }
 0x41b   : > { %p2014_p12 = pnand %p2013_p11, %p3238_p9 }
 0x41c   : > { %p2019_p13 = por %p2018_p8, %p2017_p6 }
 0x41d   : > { %p2015_p4 = pneg %p2014_p12 }
 0x41e   : > { %p2021_p10 = por %p2020_p3, %p2019_p13 }
 0x420   : > { %p2022_p1 = pnand %p2021_p10, %p2015_p4 }
 0x422   : > { %2025 = shalt.err (!%p2022_p1)
}
 0x423   : > { %s2088_s19 = smov 512   ;;  %s2089_s29 = smov 1024  }
 0x424   : > { %s2090_s16 = smov 32  }
 0x425   : > { %1822 = dma.vmem_to_hbm [thread:$0]  (%p3238_p9), %s3156_s14, 1024, %s3162_s25, %s1665_s15, %s2088_s19, %s2089_s29, %s2090_s16  }
 0x426 PF: > { %s1693_s12 = sand.u32 1, %s2056_s21   ;;  %p3239_p0 = scmp.ne.s32.totalorder %s3223_s10, 0 }
 0x427   : > { %p3240_p7 = scmp.ge.s32.totalorder %s2068_s24, 2  ;;  %s1694_s26 = scalar_lea.sflag [#allocation5], %s1693_s12 }
 0x429   : > { %p1836_p2 = pnand %p3240_p7, %p3239_p0 }
 0x42b   : > { %2051 = dma.done.wait (!%p1836_p2), %s1694_s26, 1024  }
 0x42c   : > { %2053 = vsyncadd (!%p1836_p2), %s1694_s26, 4294966272  ;;  %s3241_s8 = sld [smem:[#allocation13_spill]]  ;;  %p20_p5 = scmp.ge.s32.totalorder %s2151_s27, 4  }
 0x42d   : > { %s3242_s21 = smov %s2060_s22  ;;  %s3243_s22 = smov %s2064_s23 }
 0x42e   : > { %s3245_s24 = smov %s2151_s27  ;;  %22 = sbr.rel (!%p20_p5) target bundleno = 6 (0x6), region = 104 }
 0x432   : > { %s3244_s23 = smov %s3241_s8 }
 0x435   :  { %1699 = vsyncpa [#allocation4], 1 }
 0x436   :  { %1701 = vsyncpa [#allocation4 + $0x1], 1 }
 0x437   :  { %1702 = vsyncpa [#allocation7], 1 }
 0x438   :  { %1703 = vsyncpa [#allocation5], 1 }
 0x439   :  { %1705 = vsyncpa [#allocation5 + $0x1], 1 }

</bundles_post_ra>
